<compile_context>
chip_gen: v6e
topology: v6e:2x2x1
jax: 0.10.0
libtpu: 0.0.40
codegen_flags: <defaults>
</compile_context>

<pallas_src>
import numpy as np
import jax
import jax.numpy as jnp
from jax.experimental import pallas as pl
from jax.experimental.pallas import tpu as pltpu


def _ffl_kernel(img_ref, pred_ref, mask_ref, cw_ref, ch_ref, out_ref):
    """One grid step: a block of Bn samples x C channels.

    Per (n, c) slab computes sum_{H,W}(w * |FFT2(i) - FFT2(p)|^2) with the
    ortho 1/(H*W) factor deferred to the host-side scaling, and writes the
    chunk's partial sum into its own (1, 1, 1) output block.
    """
    bn, c, h, w = img_ref.shape
    n_slabs = bn * c

    # Masked difference — the DFT is linear, so one transform of (i - p)
    # is exactly |F(i) - F(p)|^2.
    m = jnp.broadcast_to(mask_ref[...], (bn, c, h, w))
    d = jnp.where(m == 0.0, 0.0, img_ref[...] - pred_ref[...])

    # Stage 1 (W-side DFT), all slabs fused into one flat matmul:
    #   r = [d @ cos_W | d @ sin_W]  of shape (bn*c*h, 2w)
    r = jnp.dot(d.reshape(n_slabs * h, w), cw_ref[...],
                precision=jax.lax.Precision.HIGHEST,
                preferred_element_type=jnp.float32)
    r = r.reshape(n_slabs, h, 2 * w)

    total = jnp.zeros((1, 1), jnp.float32)
    for s in range(n_slabs):                          # short static unroll
        # Stage 2 (H-side DFT), fused cos/sin:
        #   u = [[cos_H @ Rc, cos_H @ Rs], [sin_H @ Rc, sin_H @ Rs]]
        u = jnp.dot(ch_ref[...], r[s],
                    precision=jax.lax.Precision.HIGHEST,
                    preferred_element_type=jnp.float32)   # (2h, 2w)
        re = u[:h, :w] - u[h:, w:]                    #  Re(FFT2(d)) / scale
        im = u[:h, w:] + u[h:, :w]                    # -Im(FFT2(d)) / scale
        fd = re * re + im * im                        # |.|^2 (unscaled)

        # Focal weighting reduced to scalar math:
        #   sum(w * fd) = sum(fd^1.5) / sqrt(max fd); 0 when the slab is all
        #   zero (matches the NaN->0 path; clamp to [0,1] is a no-op here).
        mx = jnp.max(fd, axis=(0, 1), keepdims=True)                   # (1,1)
        s15 = jnp.sum(fd * jnp.sqrt(fd), axis=(0, 1), keepdims=True)   # (1,1)
        total = total + s15 / jnp.maximum(jnp.sqrt(mx), 1e-30)

    out_ref[...] = total.reshape(1, 1, 1)


def _dft_basis(H, W):
    kh = np.arange(H)
    kw = np.arange(W)
    ang_h = 2.0 * np.pi * np.outer(kh, kh) / H
    ang_w = 2.0 * np.pi * np.outer(kw, kw) / W
    # Fused bases: one MXU call per DFT stage.
    ch = np.concatenate([np.cos(ang_h), np.sin(ang_h)], axis=0)   # (2H, H)
    cw = np.concatenate([np.cos(ang_w), np.sin(ang_w)], axis=1)   # (W, 2W)
    return jnp.asarray(ch, jnp.float32), jnp.asarray(cw, jnp.float32)


def _pick_block_batch(N, C, H, W, *, max_slabs=8, vmem_budget=6 << 20):
    """Samples per grid step: amortize per-step overhead while keeping the
    double-buffered block + f32 intermediates well under the scoped VMEM
    limit (re-derive vmem_budget when targeting v7x's 64 MiB VMEM)."""
    per_sample = C * H * W * 4                        # f32 bytes of one sample
    cap_vmem = max(1, vmem_budget // max(1, 12 * per_sample))
    cap_unroll = max(1, max_slabs // C)               # keep the unroll short
    bn = int(min(N, cap_vmem, cap_unroll))
    while N % bn:
        bn -= 1
    return bn


def focal_frequency_loss(image, predicted, mask, *, loss_weight=2.0):
    """Pallas implementation of the FFL forward hot path. Returns scalar loss."""
    N, C, H, W = image.shape
    Cm = mask.shape[1]                                # 1 (expanded in-kernel) or C

    img = image.astype(jnp.float32)
    prd = predicted.astype(jnp.float32)
    msk = mask.astype(jnp.float32)
    ch, cw = _dft_basis(H, W)

    bn = _pick_block_batch(N, C, H, W)
    grid = N // bn

    slab_spec = pl.BlockSpec((bn, C, H, W), lambda i: (i, 0, 0, 0))
    mask_spec = pl.BlockSpec((bn, Cm, H, W), lambda i: (i, 0, 0, 0))
    # Constant index_map -> the DFT bases are only DMA'd once.
    cw_spec = pl.BlockSpec((W, 2 * W), lambda i: (0, 0))
    ch_spec = pl.BlockSpec((2 * H, H), lambda i: (0, 0))

    partial_sums = pl.pallas_call(
        _ffl_kernel,
        out_shape=jax.ShapeDtypeStruct((grid, 1, 1), jnp.float32),
        grid=(grid,),
        in_specs=[slab_spec, slab_spec, mask_spec, cw_spec, ch_spec],
        out_specs=pl.BlockSpec((1, 1, 1), lambda i: (i, 0, 0)),
        compiler_params=pltpu.CompilerParams(
            dimension_semantics=("parallel",),        # no cross-step accumulator
            vmem_limit_bytes=32 * 1024 * 1024),
    )(img, prd, msk, cw, ch)

    # loss_weight * mean(w * fd); the ortho scale (1/sqrt(HW), squared on the
    # power spectrum) is folded in here instead of inside the kernel.
    norm = loss_weight / float(N * C * H * W) / float(H * W)
    return jnp.sum(partial_sums) * norm


class FFL:
    """JAX counterpart of the PyTorch FFL module (forward only)."""

    def __init__(self, alpha=1.0, loss_weight=1.0, ave_spectrum=False,
                 log_matrix=False, batch_matrix=False, patch_factor=1, **kwargs):
        # The inner focal frequency loss is constructed with loss_weight=2.0,
        # alpha=1.0 (as in the reference module); the other flags are defaults.
        self.inner_loss_weight = 2.0
        self.alpha = 1.0  # alpha == 1.0 -> weight = sqrt(dist)**1 (in kernel)

    def __call__(self, image, predicted_image, mask, **kwargs):
        ffl = focal_frequency_loss(image, predicted_image, mask,
                                   loss_weight=self.inner_loss_weight)
        return {'loss': {'ffl': ffl}, 'values_to_log': {'FFl': ffl}}


def _reference(image, predicted, mask):
    """Pure-JAX reference mirroring the PyTorch semantics (sanity check)."""
    N, C, H, W = image.shape
    m = jnp.broadcast_to(mask, (N, C, H, W))
    i = jnp.where(m == 0.0, 0.0, image)
    p = jnp.where(m == 0.0, 0.0, predicted)
    fi = jnp.fft.fft2(i, norm='ortho')
    fp = jnp.fft.fft2(p, norm='ortho')
    diff = fi - fp
    d = diff.real ** 2 + diff.imag ** 2
    w = jnp.sqrt(d)
    w_max = jnp.max(w, axis=(-2, -1), keepdims=True)
    w = w / w_max
    w = jnp.where(jnp.isnan(w), 0.0, w)
    w = jnp.clip(w, 0.0, 1.0)
    return jnp.mean(w * d) * 2.0


if __name__ == "__main__":
    key = jax.random.PRNGKey(0)
    k1, k2, k3 = jax.random.split(key, 3)
    N, C, H, W = 2, 3, 16, 16
    image = jax.random.normal(k1, (N, C, H, W), dtype=jnp.float32)
    predicted_image = jax.random.normal(k2, (N, C, H, W), dtype=jnp.float32)
    mask = (jax.random.uniform(k3, (N, 1, H, W)) > 0.3).astype(jnp.float32)

    model = FFL()
    out = model(image, predicted_image, mask)
    loss = jax.block_until_ready(out['loss']['ffl'])

    ref = jax.block_until_ready(_reference(image, predicted_image, mask))
    assert np.allclose(np.asarray(loss), np.asarray(ref), rtol=1e-3, atol=1e-4), \
        (float(loss), float(ref))

    print("KERNEL_OK")
</pallas_src>

<mosaic_0001>
module attributes {stable_mosaic.version = 11 : i64} {
  func.func @_ffl_kernel(%arg0: i32, %arg1: memref<2x3x16x16xf32, #tpu.memory_space<vmem>>, %arg2: memref<2x3x16x16xf32, #tpu.memory_space<vmem>>, %arg3: memref<2x1x16x16xf32, #tpu.memory_space<vmem>>, %arg4: memref<16x32xf32, #tpu.memory_space<vmem>>, %arg5: memref<32x16xf32, #tpu.memory_space<vmem>>, %arg6: memref<1x1x1xf32, #tpu.memory_space<vmem>>) attributes {dimension_semantics = [#tpu.dimension_semantics<parallel>], iteration_bounds = array<i64: 1>, scalar_prefetch = 0 : i64, scratch_operands = 0 : i64, tpu.core_type = #tpu.core_type<tc>, window_params = [{transform_indices = @transform_0, window_bounds = array<i64: 2, 3, 16, 16>}, {transform_indices = @transform_1, window_bounds = array<i64: 2, 3, 16, 16>}, {transform_indices = @transform_2, window_bounds = array<i64: 2, 1, 16, 16>}, {pipeline_mode = #tpu.pipeline_mode<synchronous>, transform_indices = @transform_3, window_bounds = array<i64: 16, 32>}, {pipeline_mode = #tpu.pipeline_mode<synchronous>, transform_indices = @transform_4, window_bounds = array<i64: 32, 16>}, {transform_indices = @transform_5, window_bounds = array<i64: 1, 1, 1>}]} {
    %c0 = arith.constant 0 : index
    %c0_0 = arith.constant 0 : index
    %c0_1 = arith.constant 0 : index
    %c0_2 = arith.constant 0 : index
    %0 = vector.load %arg3[%c0, %c0_0, %c0_1, %c0_2] : memref<2x1x16x16xf32, #tpu.memory_space<vmem>>, vector<2x1x16x16xf32>
    %1 = vector.shape_cast %0 : vector<2x1x16x16xf32> to vector<2x1x16x16xf32>
    %2 = vector.broadcast %1 : vector<2x1x16x16xf32> to vector<2x3x16x16xf32>
    %cst = arith.constant 0.000000e+00 : f32
    %3 = vector.broadcast %cst : f32 to vector<2x3x16x16xf32>
    %4 = arith.cmpf oeq, %2, %3 : vector<2x3x16x16xf32>
    %c0_3 = arith.constant 0 : index
    %c0_4 = arith.constant 0 : index
    %c0_5 = arith.constant 0 : index
    %c0_6 = arith.constant 0 : index
    %5 = vector.load %arg1[%c0_3, %c0_4, %c0_5, %c0_6] : memref<2x3x16x16xf32, #tpu.memory_space<vmem>>, vector<2x3x16x16xf32>
    %c0_7 = arith.constant 0 : index
    %c0_8 = arith.constant 0 : index
    %c0_9 = arith.constant 0 : index
    %c0_10 = arith.constant 0 : index
    %6 = vector.load %arg2[%c0_7, %c0_8, %c0_9, %c0_10] : memref<2x3x16x16xf32, #tpu.memory_space<vmem>>, vector<2x3x16x16xf32>
    %7 = arith.subf %5, %6 : vector<2x3x16x16xf32>
    %cst_11 = arith.constant 0.000000e+00 : f32
    %8 = vector.broadcast %cst_11 : f32 to vector<2x3x16x16xf32>
    %9 = arith.select %4, %8, %7 : vector<2x3x16x16xi1>, vector<2x3x16x16xf32>
    %10 = vector.shape_cast %9 : vector<2x3x16x16xf32> to vector<96x16xf32>
    %c0_12 = arith.constant 0 : index
    %c0_13 = arith.constant 0 : index
    %11 = vector.load %arg4[%c0_12, %c0_13] : memref<16x32xf32, #tpu.memory_space<vmem>>, vector<16x32xf32>
    %cst_14 = arith.constant dense<0.000000e+00> : vector<96x32xf32>
    %12 = tpu.matmul %10, %11, %cst_14 {dimension_numbers = #tpu.dot_dimension_numbers<[1], [0], [0], [1], [0, 0, 1, 1], [], []>, precision = #tpu.contract_precision<fp32>} : vector<96x16xf32>, vector<16x32xf32>, vector<96x32xf32> -> vector<96x32xf32>
    %13 = vector.shape_cast %12 : vector<96x32xf32> to vector<6x16x32xf32>
    %cst_15 = arith.constant 0.000000e+00 : f32
    %14 = vector.broadcast %cst_15 : f32 to vector<1x1xf32>
    %c0_16 = arith.constant 0 : index
    %c0_17 = arith.constant 0 : index
    %15 = vector.load %arg5[%c0_16, %c0_17] : memref<32x16xf32, #tpu.memory_space<vmem>>, vector<32x16xf32>
    %16 = vector.extract_strided_slice %13 {offsets = [0, 0, 0], sizes = [1, 16, 32], strides = [1, 1, 1]} : vector<6x16x32xf32> to vector<1x16x32xf32>
    %17 = vector.shape_cast %16 : vector<1x16x32xf32> to vector<16x32xf32>
    %cst_18 = arith.constant dense<0.000000e+00> : vector<32x32xf32>
    %18 = tpu.matmul %15, %17, %cst_18 {dimension_numbers = #tpu.dot_dimension_numbers<[1], [0], [0], [1], [0, 0, 1, 1], [], []>, precision = #tpu.contract_precision<fp32>} : vector<32x16xf32>, vector<16x32xf32>, vector<32x32xf32> -> vector<32x32xf32>
    %19 = vector.extract_strided_slice %18 {offsets = [0, 0], sizes = [16, 16], strides = [1, 1]} : vector<32x32xf32> to vector<16x16xf32>
    %20 = vector.extract_strided_slice %18 {offsets = [16, 16], sizes = [16, 16], strides = [1, 1]} : vector<32x32xf32> to vector<16x16xf32>
    %21 = arith.subf %19, %20 : vector<16x16xf32>
    %22 = vector.extract_strided_slice %18 {offsets = [0, 16], sizes = [16, 16], strides = [1, 1]} : vector<32x32xf32> to vector<16x16xf32>
    %23 = vector.extract_strided_slice %18 {offsets = [16, 0], sizes = [16, 16], strides = [1, 1]} : vector<32x32xf32> to vector<16x16xf32>
    %24 = arith.addf %22, %23 : vector<16x16xf32>
    %25 = arith.mulf %21, %21 : vector<16x16xf32>
    %26 = arith.mulf %24, %24 : vector<16x16xf32>
    %27 = arith.addf %25, %26 : vector<16x16xf32>
    %28 = vector.shape_cast %27 : vector<16x16xf32> to vector<1x16x16xf32>
    %cst_19 = arith.constant dense<0xFF800000> : vector<1xf32>
    %29 = vector.multi_reduction <maximumf>, %28, %cst_19 [1, 2] : vector<1x16x16xf32> to vector<1xf32>
    %30 = vector.shape_cast %29 : vector<1xf32> to vector<1x1x1xf32>
    %31 = vector.extract %30[0, 0, 0] : f32 from vector<1x1x1xf32>
    %32 = vector.broadcast %31 : f32 to vector<1x1xf32>
    %33 = math.sqrt %27 : vector<16x16xf32>
    %34 = arith.mulf %27, %33 : vector<16x16xf32>
    %35 = vector.shape_cast %34 : vector<16x16xf32> to vector<1x16x16xf32>
    %cst_20 = arith.constant dense<0.000000e+00> : vector<1xf32>
    %36 = vector.multi_reduction <add>, %35, %cst_20 [1, 2] : vector<1x16x16xf32> to vector<1xf32>
    %37 = vector.shape_cast %36 : vector<1xf32> to vector<1x1x1xf32>
    %38 = vector.extract %37[0, 0, 0] : f32 from vector<1x1x1xf32>
    %39 = vector.broadcast %38 : f32 to vector<1x1xf32>
    %40 = math.sqrt %32 : vector<1x1xf32>
    %cst_21 = arith.constant 1.000000e-30 : f32
    %41 = vector.broadcast %cst_21 : f32 to vector<1x1xf32>
    %42 = arith.maximumf %40, %41 : vector<1x1xf32>
    %43 = arith.divf %39, %42 : vector<1x1xf32>
    %44 = arith.addf %14, %43 : vector<1x1xf32>
    %c0_22 = arith.constant 0 : index
    %c0_23 = arith.constant 0 : index
    %45 = vector.load %arg5[%c0_22, %c0_23] : memref<32x16xf32, #tpu.memory_space<vmem>>, vector<32x16xf32>
    %46 = vector.extract_strided_slice %13 {offsets = [1, 0, 0], sizes = [1, 16, 32], strides = [1, 1, 1]} : vector<6x16x32xf32> to vector<1x16x32xf32>
    %47 = vector.shape_cast %46 : vector<1x16x32xf32> to vector<16x32xf32>
    %cst_24 = arith.constant dense<0.000000e+00> : vector<32x32xf32>
    %48 = tpu.matmul %45, %47, %cst_24 {dimension_numbers = #tpu.dot_dimension_numbers<[1], [0], [0], [1], [0, 0, 1, 1], [], []>, precision = #tpu.contract_precision<fp32>} : vector<32x16xf32>, vector<16x32xf32>, vector<32x32xf32> -> vector<32x32xf32>
    %49 = vector.extract_strided_slice %48 {offsets = [0, 0], sizes = [16, 16], strides = [1, 1]} : vector<32x32xf32> to vector<16x16xf32>
    %50 = vector.extract_strided_slice %48 {offsets = [16, 16], sizes = [16, 16], strides = [1, 1]} : vector<32x32xf32> to vector<16x16xf32>
    %51 = arith.subf %49, %50 : vector<16x16xf32>
    %52 = vector.extract_strided_slice %48 {offsets = [0, 16], sizes = [16, 16], strides = [1, 1]} : vector<32x32xf32> to vector<16x16xf32>
    %53 = vector.extract_strided_slice %48 {offsets = [16, 0], sizes = [16, 16], strides = [1, 1]} : vector<32x32xf32> to vector<16x16xf32>
    %54 = arith.addf %52, %53 : vector<16x16xf32>
    %55 = arith.mulf %51, %51 : vector<16x16xf32>
    %56 = arith.mulf %54, %54 : vector<16x16xf32>
    %57 = arith.addf %55, %56 : vector<16x16xf32>
    %58 = vector.shape_cast %57 : vector<16x16xf32> to vector<1x16x16xf32>
    %cst_25 = arith.constant dense<0xFF800000> : vector<1xf32>
    %59 = vector.multi_reduction <maximumf>, %58, %cst_25 [1, 2] : vector<1x16x16xf32> to vector<1xf32>
    %60 = vector.shape_cast %59 : vector<1xf32> to vector<1x1x1xf32>
    %61 = vector.extract %60[0, 0, 0] : f32 from vector<1x1x1xf32>
    %62 = vector.broadcast %61 : f32 to vector<1x1xf32>
    %63 = math.sqrt %57 : vector<16x16xf32>
    %64 = arith.mulf %57, %63 : vector<16x16xf32>
    %65 = vector.shape_cast %64 : vector<16x16xf32> to vector<1x16x16xf32>
    %cst_26 = arith.constant dense<0.000000e+00> : vector<1xf32>
    %66 = vector.multi_reduction <add>, %65, %cst_26 [1, 2] : vector<1x16x16xf32> to vector<1xf32>
    %67 = vector.shape_cast %66 : vector<1xf32> to vector<1x1x1xf32>
    %68 = vector.extract %67[0, 0, 0] : f32 from vector<1x1x1xf32>
    %69 = vector.broadcast %68 : f32 to vector<1x1xf32>
    %70 = math.sqrt %62 : vector<1x1xf32>
    %cst_27 = arith.constant 1.000000e-30 : f32
    %71 = vector.broadcast %cst_27 : f32 to vector<1x1xf32>
    %72 = arith.maximumf %70, %71 : vector<1x1xf32>
    %73 = arith.divf %69, %72 : vector<1x1xf32>
    %74 = arith.addf %44, %73 : vector<1x1xf32>
    %c0_28 = arith.constant 0 : index
    %c0_29 = arith.constant 0 : index
    %75 = vector.load %arg5[%c0_28, %c0_29] : memref<32x16xf32, #tpu.memory_space<vmem>>, vector<32x16xf32>
    %76 = vector.extract_strided_slice %13 {offsets = [2, 0, 0], sizes = [1, 16, 32], strides = [1, 1, 1]} : vector<6x16x32xf32> to vector<1x16x32xf32>
    %77 = vector.shape_cast %76 : vector<1x16x32xf32> to vector<16x32xf32>
    %cst_30 = arith.constant dense<0.000000e+00> : vector<32x32xf32>
    %78 = tpu.matmul %75, %77, %cst_30 {dimension_numbers = #tpu.dot_dimension_numbers<[1], [0], [0], [1], [0, 0, 1, 1], [], []>, precision = #tpu.contract_precision<fp32>} : vector<32x16xf32>, vector<16x32xf32>, vector<32x32xf32> -> vector<32x32xf32>
    %79 = vector.extract_strided_slice %78 {offsets = [0, 0], sizes = [16, 16], strides = [1, 1]} : vector<32x32xf32> to vector<16x16xf32>
    %80 = vector.extract_strided_slice %78 {offsets = [16, 16], sizes = [16, 16], strides = [1, 1]} : vector<32x32xf32> to vector<16x16xf32>
    %81 = arith.subf %79, %80 : vector<16x16xf32>
    %82 = vector.extract_strided_slice %78 {offsets = [0, 16], sizes = [16, 16], strides = [1, 1]} : vector<32x32xf32> to vector<16x16xf32>
    %83 = vector.extract_strided_slice %78 {offsets = [16, 0], sizes = [16, 16], strides = [1, 1]} : vector<32x32xf32> to vector<16x16xf32>
    %84 = arith.addf %82, %83 : vector<16x16xf32>
    %85 = arith.mulf %81, %81 : vector<16x16xf32>
    %86 = arith.mulf %84, %84 : vector<16x16xf32>
    %87 = arith.addf %85, %86 : vector<16x16xf32>
    %88 = vector.shape_cast %87 : vector<16x16xf32> to vector<1x16x16xf32>
    %cst_31 = arith.constant dense<0xFF800000> : vector<1xf32>
    %89 = vector.multi_reduction <maximumf>, %88, %cst_31 [1, 2] : vector<1x16x16xf32> to vector<1xf32>
    %90 = vector.shape_cast %89 : vector<1xf32> to vector<1x1x1xf32>
    %91 = vector.extract %90[0, 0, 0] : f32 from vector<1x1x1xf32>
    %92 = vector.broadcast %91 : f32 to vector<1x1xf32>
    %93 = math.sqrt %87 : vector<16x16xf32>
    %94 = arith.mulf %87, %93 : vector<16x16xf32>
    %95 = vector.shape_cast %94 : vector<16x16xf32> to vector<1x16x16xf32>
    %cst_32 = arith.constant dense<0.000000e+00> : vector<1xf32>
    %96 = vector.multi_reduction <add>, %95, %cst_32 [1, 2] : vector<1x16x16xf32> to vector<1xf32>
    %97 = vector.shape_cast %96 : vector<1xf32> to vector<1x1x1xf32>
    %98 = vector.extract %97[0, 0, 0] : f32 from vector<1x1x1xf32>
    %99 = vector.broadcast %98 : f32 to vector<1x1xf32>
    %100 = math.sqrt %92 : vector<1x1xf32>
    %cst_33 = arith.constant 1.000000e-30 : f32
    %101 = vector.broadcast %cst_33 : f32 to vector<1x1xf32>
    %102 = arith.maximumf %100, %101 : vector<1x1xf32>
    %103 = arith.divf %99, %102 : vector<1x1xf32>
    %104 = arith.addf %74, %103 : vector<1x1xf32>
    %c0_34 = arith.constant 0 : index
    %c0_35 = arith.constant 0 : index
    %105 = vector.load %arg5[%c0_34, %c0_35] : memref<32x16xf32, #tpu.memory_space<vmem>>, vector<32x16xf32>
    %106 = vector.extract_strided_slice %13 {offsets = [3, 0, 0], sizes = [1, 16, 32], strides = [1, 1, 1]} : vector<6x16x32xf32> to vector<1x16x32xf32>
    %107 = vector.shape_cast %106 : vector<1x16x32xf32> to vector<16x32xf32>
    %cst_36 = arith.constant dense<0.000000e+00> : vector<32x32xf32>
    %108 = tpu.matmul %105, %107, %cst_36 {dimension_numbers = #tpu.dot_dimension_numbers<[1], [0], [0], [1], [0, 0, 1, 1], [], []>, precision = #tpu.contract_precision<fp32>} : vector<32x16xf32>, vector<16x32xf32>, vector<32x32xf32> -> vector<32x32xf32>
    %109 = vector.extract_strided_slice %108 {offsets = [0, 0], sizes = [16, 16], strides = [1, 1]} : vector<32x32xf32> to vector<16x16xf32>
    %110 = vector.extract_strided_slice %108 {offsets = [16, 16], sizes = [16, 16], strides = [1, 1]} : vector<32x32xf32> to vector<16x16xf32>
    %111 = arith.subf %109, %110 : vector<16x16xf32>
    %112 = vector.extract_strided_slice %108 {offsets = [0, 16], sizes = [16, 16], strides = [1, 1]} : vector<32x32xf32> to vector<16x16xf32>
    %113 = vector.extract_strided_slice %108 {offsets = [16, 0], sizes = [16, 16], strides = [1, 1]} : vector<32x32xf32> to vector<16x16xf32>
    %114 = arith.addf %112, %113 : vector<16x16xf32>
    %115 = arith.mulf %111, %111 : vector<16x16xf32>
    %116 = arith.mulf %114, %114 : vector<16x16xf32>
    %117 = arith.addf %115, %116 : vector<16x16xf32>
    %118 = vector.shape_cast %117 : vector<16x16xf32> to vector<1x16x16xf32>
    %cst_37 = arith.constant dense<0xFF800000> : vector<1xf32>
    %119 = vector.multi_reduction <maximumf>, %118, %cst_37 [1, 2] : vector<1x16x16xf32> to vector<1xf32>
    %120 = vector.shape_cast %119 : vector<1xf32> to vector<1x1x1xf32>
    %121 = vector.extract %120[0, 0, 0] : f32 from vector<1x1x1xf32>
    %122 = vector.broadcast %121 : f32 to vector<1x1xf32>
    %123 = math.sqrt %117 : vector<16x16xf32>
    %124 = arith.mulf %117, %123 : vector<16x16xf32>
    %125 = vector.shape_cast %124 : vector<16x16xf32> to vector<1x16x16xf32>
    %cst_38 = arith.constant dense<0.000000e+00> : vector<1xf32>
    %126 = vector.multi_reduction <add>, %125, %cst_38 [1, 2] : vector<1x16x16xf32> to vector<1xf32>
    %127 = vector.shape_cast %126 : vector<1xf32> to vector<1x1x1xf32>
    %128 = vector.extract %127[0, 0, 0] : f32 from vector<1x1x1xf32>
    %129 = vector.broadcast %128 : f32 to vector<1x1xf32>
    %130 = math.sqrt %122 : vector<1x1xf32>
    %cst_39 = arith.constant 1.000000e-30 : f32
    %131 = vector.broadcast %cst_39 : f32 to vector<1x1xf32>
    %132 = arith.maximumf %130, %131 : vector<1x1xf32>
    %133 = arith.divf %129, %132 : vector<1x1xf32>
    %134 = arith.addf %104, %133 : vector<1x1xf32>
    %c0_40 = arith.constant 0 : index
    %c0_41 = arith.constant 0 : index
    %135 = vector.load %arg5[%c0_40, %c0_41] : memref<32x16xf32, #tpu.memory_space<vmem>>, vector<32x16xf32>
    %136 = vector.extract_strided_slice %13 {offsets = [4, 0, 0], sizes = [1, 16, 32], strides = [1, 1, 1]} : vector<6x16x32xf32> to vector<1x16x32xf32>
    %137 = vector.shape_cast %136 : vector<1x16x32xf32> to vector<16x32xf32>
    %cst_42 = arith.constant dense<0.000000e+00> : vector<32x32xf32>
    %138 = tpu.matmul %135, %137, %cst_42 {dimension_numbers = #tpu.dot_dimension_numbers<[1], [0], [0], [1], [0, 0, 1, 1], [], []>, precision = #tpu.contract_precision<fp32>} : vector<32x16xf32>, vector<16x32xf32>, vector<32x32xf32> -> vector<32x32xf32>
    %139 = vector.extract_strided_slice %138 {offsets = [0, 0], sizes = [16, 16], strides = [1, 1]} : vector<32x32xf32> to vector<16x16xf32>
    %140 = vector.extract_strided_slice %138 {offsets = [16, 16], sizes = [16, 16], strides = [1, 1]} : vector<32x32xf32> to vector<16x16xf32>
    %141 = arith.subf %139, %140 : vector<16x16xf32>
    %142 = vector.extract_strided_slice %138 {offsets = [0, 16], sizes = [16, 16], strides = [1, 1]} : vector<32x32xf32> to vector<16x16xf32>
    %143 = vector.extract_strided_slice %138 {offsets = [16, 0], sizes = [16, 16], strides = [1, 1]} : vector<32x32xf32> to vector<16x16xf32>
    %144 = arith.addf %142, %143 : vector<16x16xf32>
    %145 = arith.mulf %141, %141 : vector<16x16xf32>
    %146 = arith.mulf %144, %144 : vector<16x16xf32>
    %147 = arith.addf %145, %146 : vector<16x16xf32>
    %148 = vector.shape_cast %147 : vector<16x16xf32> to vector<1x16x16xf32>
    %cst_43 = arith.constant dense<0xFF800000> : vector<1xf32>
    %149 = vector.multi_reduction <maximumf>, %148, %cst_43 [1, 2] : vector<1x16x16xf32> to vector<1xf32>
    %150 = vector.shape_cast %149 : vector<1xf32> to vector<1x1x1xf32>
    %151 = vector.extract %150[0, 0, 0] : f32 from vector<1x1x1xf32>
    %152 = vector.broadcast %151 : f32 to vector<1x1xf32>
    %153 = math.sqrt %147 : vector<16x16xf32>
    %154 = arith.mulf %147, %153 : vector<16x16xf32>
    %155 = vector.shape_cast %154 : vector<16x16xf32> to vector<1x16x16xf32>
    %cst_44 = arith.constant dense<0.000000e+00> : vector<1xf32>
    %156 = vector.multi_reduction <add>, %155, %cst_44 [1, 2] : vector<1x16x16xf32> to vector<1xf32>
    %157 = vector.shape_cast %156 : vector<1xf32> to vector<1x1x1xf32>
    %158 = vector.extract %157[0, 0, 0] : f32 from vector<1x1x1xf32>
    %159 = vector.broadcast %158 : f32 to vector<1x1xf32>
    %160 = math.sqrt %152 : vector<1x1xf32>
    %cst_45 = arith.constant 1.000000e-30 : f32
    %161 = vector.broadcast %cst_45 : f32 to vector<1x1xf32>
    %162 = arith.maximumf %160, %161 : vector<1x1xf32>
    %163 = arith.divf %159, %162 : vector<1x1xf32>
    %164 = arith.addf %134, %163 : vector<1x1xf32>
    %c0_46 = arith.constant 0 : index
    %c0_47 = arith.constant 0 : index
    %165 = vector.load %arg5[%c0_46, %c0_47] : memref<32x16xf32, #tpu.memory_space<vmem>>, vector<32x16xf32>
    %166 = vector.extract_strided_slice %13 {offsets = [5, 0, 0], sizes = [1, 16, 32], strides = [1, 1, 1]} : vector<6x16x32xf32> to vector<1x16x32xf32>
    %167 = vector.shape_cast %166 : vector<1x16x32xf32> to vector<16x32xf32>
    %cst_48 = arith.constant dense<0.000000e+00> : vector<32x32xf32>
    %168 = tpu.matmul %165, %167, %cst_48 {dimension_numbers = #tpu.dot_dimension_numbers<[1], [0], [0], [1], [0, 0, 1, 1], [], []>, precision = #tpu.contract_precision<fp32>} : vector<32x16xf32>, vector<16x32xf32>, vector<32x32xf32> -> vector<32x32xf32>
    %169 = vector.extract_strided_slice %168 {offsets = [0, 0], sizes = [16, 16], strides = [1, 1]} : vector<32x32xf32> to vector<16x16xf32>
    %170 = vector.extract_strided_slice %168 {offsets = [16, 16], sizes = [16, 16], strides = [1, 1]} : vector<32x32xf32> to vector<16x16xf32>
    %171 = arith.subf %169, %170 : vector<16x16xf32>
    %172 = vector.extract_strided_slice %168 {offsets = [0, 16], sizes = [16, 16], strides = [1, 1]} : vector<32x32xf32> to vector<16x16xf32>
    %173 = vector.extract_strided_slice %168 {offsets = [16, 0], sizes = [16, 16], strides = [1, 1]} : vector<32x32xf32> to vector<16x16xf32>
    %174 = arith.addf %172, %173 : vector<16x16xf32>
    %175 = arith.mulf %171, %171 : vector<16x16xf32>
    %176 = arith.mulf %174, %174 : vector<16x16xf32>
    %177 = arith.addf %175, %176 : vector<16x16xf32>
    %178 = vector.shape_cast %177 : vector<16x16xf32> to vector<1x16x16xf32>
    %cst_49 = arith.constant dense<0xFF800000> : vector<1xf32>
    %179 = vector.multi_reduction <maximumf>, %178, %cst_49 [1, 2] : vector<1x16x16xf32> to vector<1xf32>
    %180 = vector.shape_cast %179 : vector<1xf32> to vector<1x1x1xf32>
    %181 = vector.extract %180[0, 0, 0] : f32 from vector<1x1x1xf32>
    %182 = vector.broadcast %181 : f32 to vector<1x1xf32>
    %183 = math.sqrt %177 : vector<16x16xf32>
    %184 = arith.mulf %177, %183 : vector<16x16xf32>
    %185 = vector.shape_cast %184 : vector<16x16xf32> to vector<1x16x16xf32>
    %cst_50 = arith.constant dense<0.000000e+00> : vector<1xf32>
    %186 = vector.multi_reduction <add>, %185, %cst_50 [1, 2] : vector<1x16x16xf32> to vector<1xf32>
    %187 = vector.shape_cast %186 : vector<1xf32> to vector<1x1x1xf32>
    %188 = vector.extract %187[0, 0, 0] : f32 from vector<1x1x1xf32>
    %189 = vector.broadcast %188 : f32 to vector<1x1xf32>
    %190 = math.sqrt %182 : vector<1x1xf32>
    %cst_51 = arith.constant 1.000000e-30 : f32
    %191 = vector.broadcast %cst_51 : f32 to vector<1x1xf32>
    %192 = arith.maximumf %190, %191 : vector<1x1xf32>
    %193 = arith.divf %189, %192 : vector<1x1xf32>
    %194 = arith.addf %164, %193 : vector<1x1xf32>
    %195 = vector.shape_cast %194 : vector<1x1xf32> to vector<1x1x1xf32>
    %c0_52 = arith.constant 0 : index
    %c0_53 = arith.constant 0 : index
    %c0_54 = arith.constant 0 : index
    %196 = vector.load %arg6[%c0_52, %c0_53, %c0_54] : memref<1x1x1xf32, #tpu.memory_space<vmem>>, vector<1x1x1xf32>
    tpu.vector_store %arg6[%c0_52, %c0_53, %c0_54], %195 {strides = array<i32>} : memref<1x1x1xf32, #tpu.memory_space<vmem>>, vector<1x1x1xf32>,
    return
  }
  func.func @transform_0(%arg0: i32) -> (i32, i32, i32, i32) {
    %c0_i32 = arith.constant 0 : i32
    %c0_i32_0 = arith.constant 0 : i32
    %c0_i32_1 = arith.constant 0 : i32
    %c0_i32_2 = arith.constant 0 : i32
    return %arg0, %c0_i32, %c0_i32_0, %c0_i32_1 : i32, i32, i32, i32
  }
  func.func @transform_1(%arg0: i32) -> (i32, i32, i32, i32) {
    %c0_i32 = arith.constant 0 : i32
    %c0_i32_0 = arith.constant 0 : i32
    %c0_i32_1 = arith.constant 0 : i32
    %c0_i32_2 = arith.constant 0 : i32
    return %arg0, %c0_i32, %c0_i32_0, %c0_i32_1 : i32, i32, i32, i32
  }
  func.func @transform_2(%arg0: i32) -> (i32, i32, i32, i32) {
    %c0_i32 = arith.constant 0 : i32
    %c0_i32_0 = arith.constant 0 : i32
    %c0_i32_1 = arith.constant 0 : i32
    %c0_i32_2 = arith.constant 0 : i32
    return %arg0, %c0_i32, %c0_i32_0, %c0_i32_1 : i32, i32, i32, i32
  }
  func.func @transform_3(%arg0: i32) -> (i32, i32) {
    %c0_i32 = arith.constant 0 : i32
    %c0_i32_0 = arith.constant 0 : i32
    %c0_i32_1 = arith.constant 0 : i32
    return %c0_i32, %c0_i32_0 : i32, i32
  }
  func.func @transform_4(%arg0: i32) -> (i32, i32) {
    %c0_i32 = arith.constant 0 : i32
    %c0_i32_0 = arith.constant 0 : i32
    %c0_i32_1 = arith.constant 0 : i32
    return %c0_i32, %c0_i32_0 : i32, i32
  }
  func.func @transform_5(%arg0: i32) -> (i32, i32, i32) {
    %c0_i32 = arith.constant 0 : i32
    %c0_i32_0 = arith.constant 0 : i32
    %c0_i32_1 = arith.constant 0 : i32
    return %arg0, %c0_i32, %c0_i32_0 : i32, i32, i32
  }
}

</mosaic_0001>

<bundles_post_ra>
// kernel: tpu_custom_call.1
= control target key start
LH: loop header
LB: loop body
LE: loop exit
PB: predicated region body
PF: predicated region fallthrough
CT: control target
= control target key end

     0   :  { %10 = vsyncpa [#allocation3], 0  ;;  %s6927_s0 = inlined_call_operand.hbm [shape: f32[2,3,16,16], index: 0, kind: input, shape index: {}]   ;;  %s6928_s1 = inlined_call_operand.hbm [shape: f32[2,3,16,16], index: 1, kind: input, shape index: {}]   ;;  %s6929_s2 = inlined_call_operand.vmem [shape: f32[2,1,16,16], index: 2, kind: input, shape index: {}]   ;;  %s6930_s3 = inlined_call_operand.vmem [shape: f32[16,32], index: 3, kind: input, shape index: {}]   ;;  %s6931_s4 = inlined_call_operand.vmem [shape: f32[32,16], index: 4, kind: input, shape index: {}]   ;;  %s6932_s5 = inlined_call_operand.hbm [shape: f32[1,1,1], index: 5, kind: output, shape index: {}]  }
   0x1   :  { %11 = vsyncpa [#allocation6], 0 }
   0x2   :  { %12 = vsyncpa [#allocation4], 0  ;;  %s6085_s18 = smov [#allocation2]  }
   0x3   :  { %s18_s19 = sshll.u32 %s6085_s18, 4  ;;  %s19_s19 = int_to_ptr.vmem [resolvable:$true] %s18_s19 }
   0x4   :  { %s6027_s20 = scalar_lea.vmem %s19_s19, 1536  ;;  %p6032_p1 = scmp.lt.s32.totalorder %s19_s19, %s19_s19 }
   0x5   :  { %p6028_p0 = scmp.ne.s32.totalorder %s19_s19, %s6027_s20  ;;  %p6033_p2 = scmp.lt.s32.totalorder %s6027_s20, %s6027_s20 }
   0x7   :  { %p6034_p3 = por %p6033_p2, %p6032_p1 }
   0x9   :  { %p6035_p4 = pnand %p6034_p3, %p6028_p0 }
   0xb   :  { %6038 = shalt.err (!%p6035_p4)
}
   0xc   :  { %s6086_s21 = smov 128   ;;  %s6087_s22 = smov 8  }
   0xd   :  { %24 = dma.hbm_to_vmem [thread:$0]  %s6927_s0, 1536, %s19_s19, [#allocation3], %s6086_s21, %s6086_s21, %s6087_s22  }
   0xe   :  { %s6088_s25 = smov [#allocation5]  }
   0xf   :  { %s30_s26 = sshll.u32 %s6088_s25, 4  ;;  %s31_s26 = int_to_ptr.vmem [resolvable:$true] %s30_s26 }
  0x10   :  { %s6047_s27 = scalar_lea.vmem %s31_s26, 1536  ;;  %p6052_p6 = scmp.lt.s32.totalorder %s31_s26, %s31_s26 }
  0x11   :  { %p6048_p5 = scmp.ne.s32.totalorder %s31_s26, %s6047_s27  ;;  %p6053_p7 = scmp.lt.s32.totalorder %s6047_s27, %s6047_s27 }
  0x13   :  { %p6054_p8 = por %p6053_p7, %p6052_p6 }
  0x15   :  { %p6055_p9 = pnand %p6054_p8, %p6048_p5 }
  0x17   :  { %6058 = shalt.err (!%p6055_p9)
}
  0x18   :  { %36 = dma.hbm_to_vmem [thread:$0]  %s6928_s1, 1536, %s31_s26, [#allocation6], %s6086_s21, %s6086_s21, %s6087_s22  }
  0x19   :  { %6079 = dma.done.wait [#allocation3], 1536  }
  0x1a   :  { %6080 = vsyncadd [#allocation3], 4294965760 }
  0x1b   :  { %6081 = dma.done.wait [#allocation6], 1536  }
  0x1c   :  { %6082 = vsyncadd [#allocation6], 4294965760  ;;  %v106_v0 = vld [vmem:[%s6930_s3 + $0x8] sm:$0xff]  ;;  %v105_v1 = vld [vmem:[%s6930_s3] sm:$0xff]  ;;  %vm107_vm1 = vcmask 130048   ;;  %s6090_s21 = smov 112  }
  0x1d   :  { %v49_v2 = vld [vmem:[%s6929_s2] sm:$0xff]  ;;  %v6137_v3 = vand.u32 4294901760, %v106_v0  ;;  %v6139_v4 = vand.u32 4294901760, %v105_v1  ;;  %v6144_v7 = vld [vmem:[%s6929_s2 + $0x8] sm:$0xff]  ;;  %v59_v11 = vld [vmem:[#allocation2 + $0x10] sm:$0xff]  ;;  %s6091_s8 = smov [#allocation7]  }
  0x1e   :  { %vm53_vm0 = vcmp.eq.f32.partialorder %v49_v2, 0.0  ;;  %v57_v5 = vld [vmem:[#allocation2] sm:$0xff]  ;;  %vm54_vm2 = vcmp.eq.f32.partialorder %v6144_v7, 0.0  ;;  %v58_v9 = vld [vmem:[#allocation2 + $0x8] sm:$0xff]  ;;  %v71_v15 = vld [vmem:[#allocation5 + $0x10] sm:$0xff]  ;;  %s5138_s9 = sshll.u32 %s6091_s8, 4  ;;  %s5139_s9 = int_to_ptr.vmem [resolvable:$true] %s5138_s9 }
  0x1f   :  { %v69_v6 = vld [vmem:[#allocation5] sm:$0xff]  ;;  %v70_v10 = vld [vmem:[#allocation5 + $0x8] sm:$0xff]  ;;  %5448 = vmatprep.subr.mxu0 %v6137_v3  ;;  %v6149_v12 = vsub.f32 %v106_v0, %v6137_v3  ;;  %v6152_v13 = vsub.f32 %v105_v1, %v6139_v4  ;;  %v60_v16 = vld [vmem:[#allocation2 + $0x18] sm:$0xff]  ;;  %v83_v19 = vsub.f32 %v59_v11, %v71_v15  ;;  %s6059_s1 = scalar_lea.vmem %s5139_s9, 16  ;;  %s6063_s10 = scalar_lea.vmem %s5139_s9, 32 }
  0x20   :  { %v81_v8 = vsub.f32 %v57_v5, %v69_v6  ;;  %v82_v14 = vsub.f32 %v58_v9, %v70_v10  ;;  %v72_v17 = vld [vmem:[#allocation5 + $0x18] sm:$0xff]  ;;  %5449 = vmatpush3.msra.mxu0 %v6137_v3  ;;  %v61_v25 = vld [vmem:[#allocation2 + $0x20] sm:$0xff]  ;;  %v62_v35 = vld [vmem:[#allocation2 + $0x28] sm:$0xff]  ;;  %p6060_p10 = scmp.ne.s32.totalorder %s5139_s9, %s6059_s1  ;;  %p6064_p11 = scmp.lt.s32.totalorder %s5139_s9, %s5139_s9 }
  0x21   :  { %v84_v20 = vsub.f32 %v60_v16, %v72_v17  ;;  %v6157_v21 = vand.u32 4294901760, %v6149_v12  ;;  %5450 = vmatprep.subr.mxu0 %v6139_v4  ;;  %v6161_v22 = vand.u32 4294901760, %v6152_v13  ;;  %v73_v26 = vld [vmem:[#allocation5 + $0x20] sm:$0xff]  ;;  %v95_v29 = vsel %vm53_vm0, 0.0, %v83_v19  ;;  %v74_v36 = vld [vmem:[#allocation5 + $0x28] sm:$0xff]  ;;  %v6191_v41 = vld [vmem:[%s6929_s2 + $0x10] sm:$0xff]  ;;  %p6065_p12 = scmp.lt.s32.totalorder %s6063_s10, %s6059_s1 }
  0x22   :  { %v93_v18 = vsel %vm53_vm0, 0.0, %v81_v8  ;;  %v94_v24 = vsel %vm54_vm2, 0.0, %v82_v14  ;;  %5451 = vmatpush3.msra.mxu0 %v6139_v4  ;;  %v115_v34 = vsel %vm107_vm1, %v95_v29, 0  ;;  %v85_v40 = vsub.f32 %v61_v25, %v73_v26  ;;  %v63_v50 = vld [vmem:[#allocation2 + $0x30] sm:$0xff]  ;;  %v6220_v59 = vld [vmem:[%s6929_s2 + $0x18] sm:$0xff]  ;;  %v65_v8 = vld [vmem:[#allocation2 + $0x40] sm:$0xff] }
  0x23   :  { %v109_v23 = vsel %vm107_vm1, %v93_v18, 0  ;;  %v112_v28 = vsel %vm107_vm1, %v94_v24, 0  ;;  %v96_v30 = vsel %vm54_vm2, 0.0, %v84_v20  ;;  %v363_v31 = vsub.f32 %v6149_v12, %v6157_v21  ;;  %5492 = vmatprep.subr.mxu0 %v6149_v12  ;;  %v75_v51 = vld [vmem:[#allocation5 + $0x30] sm:$0xff]  ;;  %v64_v0 = vld [vmem:[#allocation2 + $0x38] sm:$0xff]  ;;  %v77_v9 = vld [vmem:[#allocation5 + $0x40] sm:$0xff]  ;;  %p6066_p13 = por %p6065_p12, %p6064_p11 }
  0x24   :  { %v6167_v27 = vand.u32 4294901760, %v109_v23  ;;  %v370_v32 = vsub.f32 %v6152_v13, %v6161_v22  ;;  %v6177_v33 = vand.u32 4294901760, %v112_v28  ;;  %v6185_v38 = vand.u32 4294901760, %v115_v34  ;;  %v76_v1 = vld [vmem:[#allocation5 + $0x38] sm:$0xff]  ;;  %v66_v10 = vld [vmem:[#allocation2 + $0x48] sm:$0xff]  ;;  %v67_v17 = vld [vmem:[#allocation2 + $0x50] sm:$0xff] }
  0x25   :  { %v118_v39 = vsel %vm107_vm1, %v96_v30, 0  ;;  %v364_v42 = vand.u32 4294901760, %v363_v31  ;;  %v97_v48 = vsel %vm53_vm0, 0.0, %v85_v40  ;;  %v86_v49 = vsub.f32 %v62_v35, %v74_v36  ;;  %v78_v16 = vld [vmem:[#allocation5 + $0x48] sm:$0xff]  ;;  %v79_v18 = vld [vmem:[#allocation5 + $0x50] sm:$0xff]  ;;  %v68_v25 = vld [vmem:[#allocation2 + $0x58] sm:$0xff]  ;;  %p6067_p0 = pnand %p6066_p13, %p6060_p10 }
  0x26   :  { %v6182_v37 = vsub.f32 %v109_v23, %v6167_v27  ;;  %5474 = vmatprep.mubr.f32.mxu1 %v6167_v27  ;;  %v371_v43 = vand.u32 4294901760, %v370_v32  ;;  %v6194_v44 = vsub.f32 %v112_v28, %v6177_v33  ;;  %v6196_v45 = vand.u32 4294901760, %v118_v39  ;;  %v80_v26 = vld [vmem:[#allocation5 + $0x58] sm:$0xff] }
  0x27   :  { %v6200_v47 = vsub.f32 %v115_v34, %v6185_v38  ;;  %5470 = vmatprep.subr.mxu1 %v364_v42  ;;  %v121_v54 = vsel %vm107_vm1, %v97_v48, 0  ;;  %vm55_vm3 = vcmp.eq.f32.partialorder %v6191_v41, 0.0  ;;  %v98_v58 = vsel %vm54_vm2, 0.0, %v86_v49 }
  0x28   :  { %v213_v46 = vand.u32 4294901760, %v6182_v37  ;;  %v223_v52 = vand.u32 4294901760, %v6194_v44  ;;  %v6205_v53 = vsub.f32 %v118_v39, %v6196_v45  ;;  %5471 = vmatpush3.msra.mxu1 %v364_v42  ;;  %v6213_v57 = vand.u32 4294901760, %v121_v54 }
  0x29   :  { %v233_v56 = vand.u32 4294901760, %v6200_v47  ;;  %5472 = vmatprep.subr.mxu1 %v371_v43  ;;  %v124_v62 = vsel %vm107_vm1, %v98_v58, 0  ;;  %v87_v63 = vsub.f32 %v63_v50, %v75_v51  ;;  %vm56_vm4 = vcmp.eq.f32.partialorder %v6220_v59, 0.0 }
  0x2a   :  { %v214_v55 = vsub.f32 %v6182_v37, %v213_v46  ;;  %v224_v60 = vsub.f32 %v6194_v44, %v223_v52  ;;  %v243_v61 = vand.u32 4294901760, %v6205_v53  ;;  %5473 = vmatpush3.msra.mxu1 %v371_v43  ;;  %v6231_v6 = vsub.f32 %v121_v54, %v6213_v57 }
  0x2b   :  { %v234_v5 = vsub.f32 %v6200_v47, %v233_v56  ;;  %v6233_v7 = vand.u32 4294901760, %v124_v62  ;;  %5475 = vmatmul.mubr.f32.vlgmr.msra.gmra.mxu1 %v6177_v33  ;;  %v99_v15 = vsel %vm55_vm3, 0.0, %v87_v63  ;;  %5514 = vmatprep.subr.mxu1 %v6137_v3  ;;  %v88_v30 = vsub.f32 %v64_v0, %v76_v1 }
  0x2c   :  { %v215_v2 = vand.u32 4294901760, %v214_v55  ;;  %v225_v11 = vand.u32 4294901760, %v224_v60  ;;  %v244_v14 = vsub.f32 %v6205_v53, %v243_v61  ;;  %5477 = vmatprep.mubr.f32.mxu1 %v6185_v38  ;;  %v253_v20 = vand.u32 4294901760, %v6231_v6  ;;  %5515 = vmatpush3.msra.mxu1 %v6137_v3 }
  0x2d   :  { %v235_v19 = vand.u32 4294901760, %v234_v5  ;;  %v6246_v23 = vsub.f32 %v124_v62, %v6233_v7  ;;  %v127_v24 = vsel %vm107_vm1, %v99_v15, 0  ;;  %v89_v31 = vsub.f32 %v65_v8, %v77_v9  ;;  %5516 = vmatprep.subr.mxu1 %v6139_v4 }
  0x2e   :  { %5452 = vmatprep.mubr.f32.mxu0 %v215_v2  ;;  %v245_v28 = vand.u32 4294901760, %v244_v14  ;;  %v6249_v29 = vand.u32 4294901760, %v127_v24  ;;  %v254_v32 = vsub.f32 %v6231_v6, %v253_v20  ;;  %v90_v35 = vsub.f32 %v66_v10, %v78_v16  ;;  %5517 = vmatpush3.msra.mxu1 %v6139_v4 }
  0x2f   :  { %5453 = vmatmul.mubr.f32.vlgmr.msra.gmra.mxu0 %v225_v11  ;;  %v263_v34 = vand.u32 4294901760, %v6246_v23  ;;  %v91_v36 = vsub.f32 %v67_v17, %v79_v18  ;;  %5478 = vmatmul.mubr.f32.gmra.mxu1 %v6196_v45  ;;  %v100_v40 = vsel %vm56_vm4, 0.0, %v88_v30  ;;  %v101_v42 = vsel %vm55_vm3, 0.0, %v89_v31 }
  0x30   :  { %5455 = vmatprep.mubr.f32.mxu0 %v235_v19  ;;  %5493 = vmatpush3.msra.mxu0 %v6149_v12  ;;  %v6259_v39 = vsub.f32 %v127_v24, %v6249_v29  ;;  %v92_v43 = vsub.f32 %v68_v25, %v80_v26  ;;  %v255_v48 = vand.u32 4294901760, %v254_v32  ;;  %v130_v49 = vsel %vm107_vm1, %v100_v40, 0 }
  0x31   :  { %5494 = vmatprep.subr.mxu0 %v6152_v13  ;;  %5480 = vmatprep.mubr.f32.mxu1 %v6213_v57  ;;  %v264_v12 = vsub.f32 %v6246_v23, %v263_v34  ;;  %v133_v50 = vsel %vm107_vm1, %v101_v42, 0  ;;  %v6274_v54 = vand.u32 4294901760, %v130_v49  ;;  %v102_v58 = vsel %vm56_vm4, 0.0, %v90_v35 }
  0x32   :  { %v273_v51 = vand.u32 4294901760, %v6259_v39  ;;  %v6276_v55 = vand.u32 4294901760, %v133_v50  ;;  %v136_v62 = vsel %vm107_vm1, %v102_v58, 0  ;;  %v103_v63 = vsel %vm55_vm3, 0.0, %v91_v36  ;;  %5495 = vmatpush3.msra.mxu0 %v6152_v13  ;;  %5558 = vmatprep.subr.mxu1 %v6137_v3 }
  0x33   :  { %5456 = vmatmul.mubr.f32.gmra.mxu0 %v245_v28  ;;  %v265_v60 = vand.u32 4294901760, %v264_v12  ;;  %v104_v0 = vsel %vm56_vm4, 0.0, %v92_v43  ;;  %5481 = vmatmul.mubr.f32.gmra.mxu1 %v6233_v7  ;;  %v282_v2 = vsub.f32 %v130_v49, %v6274_v54  ;;  %v6295_v8 = vand.u32 4294901760, %v136_v62 }
  0x34   :  { %5458 = vmatprep.mubr.f32.mxu0 %v255_v48  ;;  %v274_v1 = vsub.f32 %v6259_v39, %v273_v51  ;;  %v6293_v5 = vsub.f32 %v133_v50, %v6276_v55  ;;  %5536 = vmatprep.subr.mxu0 %v6157_v21  ;;  %v139_v41 = vsel %vm107_vm1, %v103_v63, 0  ;;  %v142_v13 = vsel %vm107_vm1, %v104_v0, 0 }
  0x35   :  { %5483 = vmatprep.mubr.f32.mxu1 %v6249_v29  ;;  %v283_v9 = vand.u32 4294901760, %v282_v2  ;;  %v302_v11 = vsub.f32 %v136_v62, %v6295_v8  ;;  %v6304_v14 = vand.u32 4294901760, %v139_v41  ;;  %v6306_v15 = vand.u32 4294901760, %v142_v13 }
  0x36   :  { %v275_v59 = vand.u32 4294901760, %v274_v1  ;;  %v293_v10 = vand.u32 4294901760, %v6293_v5 }
  0x37   :  { %5459 = vmatmul.mubr.f32.gmra.mxu0 %v265_v60  ;;  %v284_v16 = vsub.f32 %v282_v2, %v283_v9  ;;  %5484 = vmatmul.mubr.f32.gmra.mxu1 %v6274_v54  ;;  %v303_v18 = vand.u32 4294901760, %v302_v11  ;;  %v312_v19 = vsub.f32 %v139_v41, %v6304_v14  ;;  %v322_v24 = vsub.f32 %v142_v13, %v6306_v15 }
  0x38   :  { %5461 = vmatprep.mubr.f32.mxu0 %v275_v59  ;;  %v294_v17 = vsub.f32 %v6293_v5, %v293_v10  ;;  %5486 = vmatprep.mubr.f32.mxu1 %v6276_v55 }
  0x39   :  { %v285_v25 = vand.u32 4294901760, %v284_v16  ;;  %v304_v28 = vsub.f32 %v302_v11, %v303_v18  ;;  %v313_v30 = vand.u32 4294901760, %v312_v19  ;;  %v323_v31 = vand.u32 4294901760, %v322_v24 }
  0x3a   :  { %v295_v26 = vand.u32 4294901760, %v294_v17 }
  0x3b   :  { %5462 = vmatmul.mubr.f32.gmra.mxu0 %v285_v25  ;;  %v305_v32 = vand.u32 4294901760, %v304_v28  ;;  %5487 = vmatmul.mubr.f32.gmra.mxu1 %v6295_v8  ;;  %v314_v35 = vsub.f32 %v312_v19, %v313_v30  ;;  %v324_v36 = vsub.f32 %v322_v24, %v323_v31  ;;  %v1078_v25 = vld [vmem:[%s6931_s4 + $0x10] sm:$0xff] }
  0x3c   :  { %5464 = vmatprep.mubr.f32.mxu0 %v295_v26  ;;  %5489 = vmatprep.mubr.f32.mxu1 %v6304_v14 }
  0x3d   :  { %v315_v40 = vand.u32 4294901760, %v314_v35  ;;  %v325_v42 = vand.u32 4294901760, %v324_v36 }
  0x3f   :  { %5465 = vmatmul.mubr.f32.gmra.mxu0 %v305_v32  ;;  %5490 = vmatmul.mubr.f32.gmra.mxu1 %v6306_v15  ;;  %v1079_v32 = vld [vmem:[%s6931_s4 + $0x18] sm:$0xff] }
  0x40   :  { %5467 = vmatprep.mubr.f32.mxu0 %v315_v40  ;;  %5518 = vmatprep.mubr.f32.mxu1 %v213_v46  ;;  %v1087_v40 = vsel %vm107_vm1, %v1078_v25, 0 }
  0x43   :  { %5468 = vmatmul.mubr.f32.gmra.mxu0 %v325_v42  ;;  %5519 = vmatmul.mubr.f32.vlgmr.msra.gmra.mxu1 %v223_v52 }
  0x44   :  { %5496 = vmatprep.mubr.f32.mxu0 %v6182_v37  ;;  %5521 = vmatprep.mubr.f32.mxu1 %v233_v56 }
  0x45   :  { %5559 = vmatpush3.msra.mxu1 %v6137_v3  ;;  %v1076_v3 = vld [vmem:[%s6931_s4] sm:$0xff] }
  0x46   :  { %5560 = vmatprep.subr.mxu1 %v6139_v4 }
  0x47   :  { %5497 = vmatmul.mubr.f32.vlgmr.msra.gmra.mxu0 %v6194_v44  ;;  %5522 = vmatmul.mubr.f32.gmra.mxu1 %v243_v61 }
  0x48   :  { %5499 = vmatprep.mubr.f32.mxu0 %v6200_v47  ;;  %5524 = vmatprep.mubr.f32.mxu1 %v253_v20 }
  0x49   :  { %5537 = vmatpush3.msra.mxu0 %v6157_v21  ;;  %5561 = vmatpush3.msra.mxu1 %v6139_v4  ;;  %v1081_v4 = vsel %vm107_vm1, %v1076_v3, 0 }
  0x4a   :  { %5538 = vmatprep.subr.mxu0 %v6161_v22  ;;  %v6372_v21 = vand.u32 4294901760, %v1081_v4 }
  0x4b   :  { %5500 = vmatmul.mubr.f32.gmra.mxu0 %v6205_v53  ;;  %5525 = vmatmul.mubr.f32.gmra.mxu1 %v263_v34 }
  0x4c   :  { %5502 = vmatprep.mubr.f32.mxu0 %v6231_v6  ;;  %5527 = vmatprep.mubr.f32.mxu1 %v273_v51 }
  0x4d   :  { %5539 = vmatpush3.msra.mxu0 %v6161_v22  ;;  %v6375_v22 = vsub.f32 %v1081_v4, %v6372_v21 }
  0x4f   :  { %5503 = vmatmul.mubr.f32.gmra.mxu0 %v6246_v23  ;;  %5528 = vmatmul.mubr.f32.gmra.mxu1 %v283_v9 }
  0x50   :  { %5505 = vmatprep.mubr.f32.mxu0 %v6259_v39  ;;  %5530 = vmatprep.mubr.f32.mxu1 %v293_v10 }
  0x53   :  { %5506 = vmatmul.mubr.f32.gmra.mxu0 %v282_v2  ;;  %5531 = vmatmul.mubr.f32.gmra.mxu1 %v303_v18  ;;  %v1077_v18 = vld [vmem:[%s6931_s4 + $0x8] sm:$0xff]  ;;  %s6089_s4 = smov 16  }
  0x54   :  { %5508 = vmatprep.mubr.f32.mxu0 %v6293_v5  ;;  %5533 = vmatprep.mubr.f32.mxu1 %v313_v30  ;;  %v1084_v28 = vsel %vm107_vm1, %v1077_v18, 0 }
  0x55   :  { %v6427_v4 = vand.u32 4294901760, %v1084_v28 }
  0x57   :  { %5509 = vmatmul.mubr.f32.gmra.mxu0 %v302_v11  ;;  %5534 = vmatmul.mubr.f32.gmra.mxu1 %v323_v31 }
  0x58   :  { %5511 = vmatprep.mubr.f32.mxu0 %v312_v19  ;;  %5562 = vmatprep.mubr.f32.mxu1 %v6167_v27 }
  0x5b   :  { %5512 = vmatmul.mubr.f32.gmra.mxu0 %v322_v24  ;;  %5563 = vmatmul.mubr.f32.vlgmr.msra.gmra.mxu1 %v6177_v33 }
  0x5c   :  { %5540 = vmatprep.mubr.f32.mxu0 %v6167_v27  ;;  %5565 = vmatprep.mubr.f32.mxu1 %v6185_v38  ;;  %v6379_v27 = vand.u32 4294901760, %v6375_v22 }
  0x5f   :  { %5541 = vmatmul.mubr.f32.vlgmr.msra.gmra.mxu0 %v6177_v33  ;;  %5566 = vmatmul.mubr.f32.gmra.mxu1 %v6196_v45  ;;  %v1162_v33 = vsub.f32 %v6375_v22, %v6379_v27 }
  0x60   :  { %5543 = vmatprep.mubr.f32.mxu0 %v6185_v38  ;;  %5568 = vmatprep.mubr.f32.mxu1 %v6213_v57 }
  0x61   :  { %v6383_v37 = vand.u32 4294901760, %v1162_v33 }
  0x63   :  { %5544 = vmatmul.mubr.f32.gmra.mxu0 %v6196_v45  ;;  %5569 = vmatmul.mubr.f32.gmra.mxu1 %v6233_v7 }
  0x64   :  { %5546 = vmatprep.mubr.f32.mxu0 %v6213_v57  ;;  %5571 = vmatprep.mubr.f32.mxu1 %v6249_v29 }
  0x67   :  { %5547 = vmatmul.mubr.f32.gmra.mxu0 %v6233_v7  ;;  %5572 = vmatmul.mubr.f32.gmra.mxu1 %v6274_v54 }
  0x68   :  { %5549 = vmatprep.mubr.f32.mxu0 %v6249_v29  ;;  %5574 = vmatprep.mubr.f32.mxu1 %v6276_v55 }
  0x6b   :  { %5550 = vmatmul.mubr.f32.gmra.mxu0 %v6274_v54  ;;  %5575 = vmatmul.mubr.f32.gmra.mxu1 %v6295_v8 }
  0x6c   :  { %5552 = vmatprep.mubr.f32.mxu0 %v6276_v55  ;;  %5577 = vmatprep.mubr.f32.mxu1 %v6304_v14 }
  0x6f   :  { %5553 = vmatmul.mubr.f32.gmra.mxu0 %v6295_v8  ;;  %5578 = vmatmul.mubr.f32.gmra.mxu1 %v6306_v15 }
  0x70   :  { %5555 = vmatprep.mubr.f32.mxu0 %v6304_v14  ;;  %5594 = vmatprep.mubr.f32.mxu1 %v6372_v21 }
  0x73   :  { %5556 = vmatmul.mubr.f32.gmra.mxu0 %v6306_v15 }
  0x74   :  { %5584 = vmatprep.mubr.f32.mxu0 %v6383_v37 }
  0xeb   :  { %v6386_v38 = vpop.f32.mrf.mxu1 }
  0xed   :  { %v6390_v45 = vpop.f32.mrf.mxu1 }
  0xef   :  { %v6388_v44 = vpop.f32.mrf.mxu0  ;;  %v6394_v47 = vpop.f32.mrf.mxu1 }
  0xf1   :  { %v6392_v46 = vpop.f32.mrf.mxu0  ;;  %v6398_v53 = vpop.f32.mrf.mxu1 }
  0xf3   :  { %v6396_v52 = vpop.f32.mrf.mxu0  ;;  %v5482_v57 = vpop.f32.mrf.mxu1 }
  0xf5   :  { %v6400_v56 = vpop.f32.mrf.mxu0  ;;  %v432_v6 = vpop.f32.mrf.mxu1 }
  0xf7   :  { %v5460_v61 = vpop.f32.mrf.mxu0  ;;  %v5485_v23 = vpop.f32.mrf.mxu1 }
  0xf8   :  { %v6402_v7 = vadd.f32 %v5482_v57, %v5460_v61  ;;  %v1090_v61 = vsel %vm107_vm1, %v1079_v32, 0 }
  0xf9   :  { %v257_v20 = vpop.f32.mrf.mxu0  ;;  %v444_v34 = vpop.f32.mrf.mxu1 }
  0xfa   :  { %v433_v29 = vadd.f32 %v432_v6, %v257_v20 }
  0xfb   :  { %v5463_v39 = vpop.f32.mrf.mxu0  ;;  %v5488_v43 = vpop.f32.mrf.mxu1 }
  0xfc   :  { %v451_v48 = vadd.f32 %v5485_v23, %v5463_v39  ;;  %v6432_v23 = vand.u32 4294901760, %v1087_v40 }
  0xfd   :  { %v277_v12 = vpop.f32.mrf.mxu0  ;;  %v456_v49 = vpop.f32.mrf.mxu1 }
  0xfe   :  { %v445_v50 = vadd.f32 %v444_v34, %v277_v12  ;;  %v6441_v12 = vand.u32 4294901760, %v1090_v61 }
  0xff   :  { %v5466_v51 = vpop.f32.mrf.mxu0  ;;  %v5491_v54 = vpop.f32.mrf.mxu1 }
 0x100   :  { %v463_v55 = vadd.f32 %v5488_v43, %v5466_v51 }
 0x101   :  { %v297_v58 = vpop.f32.mrf.mxu0  ;;  %v468_v60 = vpop.f32.mrf.mxu1 }
 0x102   :  { %v457_v62 = vadd.f32 %v456_v49, %v297_v58  ;;  %v409_v49 = vadd.f32 %v6390_v45, %v6392_v46  ;;  %v6458_v46 = vsub.f32 %v1090_v61, %v6441_v12 }
 0x103   :  { %v5469_v63 = vpop.f32.mrf.mxu0  ;;  %v5520_v0 = vpop.f32.mrf.mxu1 }
 0x104   :  { %v475_v1 = vadd.f32 %v5491_v54, %v5469_v63 }
 0x105   :  { %v317_v2 = vpop.f32.mrf.mxu0  ;;  %v702_v5 = vpop.f32.mrf.mxu1 }
 0x106   :  { %v469_v8 = vadd.f32 %v468_v60, %v317_v2 }
 0x107   :  { %v5498_v41 = vpop.f32.mrf.mxu0  ;;  %v6404_v13 = vpop.f32.mrf.mxu1 }
 0x109   :  { %v550_v59 = vpop.f32.mrf.mxu0  ;;  %v6406_v9 = vpop.f32.mrf.mxu1 }
 0x10b   :  { %v5501_v10 = vpop.f32.mrf.mxu0  ;;  %v6408_v11 = vpop.f32.mrf.mxu1 }
 0x10d   :  { %v6410_v14 = vpop.f32.mrf.mxu0  ;;  %v734_v15 = vpop.f32.mrf.mxu1 }
 0x10f   :  { %v6412_v16 = vpop.f32.mrf.mxu0  ;;  %v5529_v17 = vpop.f32.mrf.mxu1 }
 0x111   :  { %v578_v19 = vpop.f32.mrf.mxu0  ;;  %v750_v24 = vpop.f32.mrf.mxu1 }
 0x112   :  { %v579_v26 = vadd.f32 %v578_v19, %v433_v29  ;;  %v415_v29 = vadd.f32 %v6386_v38, %v6388_v44  ;;  %v6448_v38 = vsub.f32 %v1087_v40, %v6432_v23  ;;  %v551_v44 = vadd.f32 %v550_v59, %v409_v49 }
 0x113   :  { %v5507_v30 = vpop.f32.mrf.mxu0  ;;  %v5532_v31 = vpop.f32.mrf.mxu1 }
 0x114   :  { %v6424_v35 = vadd.f32 %v734_v15, %v579_v26  ;;  %v600_v36 = vadd.f32 %v5507_v30, %v451_v48  ;;  %v6439_v48 = vsub.f32 %v1084_v28, %v6427_v4  ;;  %v6463_v59 = vand.u32 4294901760, %v6448_v38 }
 0x115   :  { %v592_v42 = vpop.f32.mrf.mxu0  ;;  %v766_v3 = vpop.f32.mrf.mxu1 }
 0x116   :  { %v6429_v33 = vadd.f32 %v5529_v17, %v600_v36  ;;  %v593_v57 = vadd.f32 %v592_v42, %v445_v50  ;;  %v558_v50 = vadd.f32 %v5498_v41, %v415_v29  ;;  %v6453_v15 = vand.u32 4294901760, %v6439_v48 }
 0x117   :  { %v5510_v6 = vpop.f32.mrf.mxu0  ;;  %v5535_v20 = vpop.f32.mrf.mxu1  ;;  %v421_v42 = vadd.f32 %v6398_v53, %v6400_v56 }
 0x118   :  { %v6436_v34 = vadd.f32 %v750_v24, %v593_v57  ;;  %v614_v39 = vadd.f32 %v5510_v6, %v463_v55  ;;  %v711_v17 = vadd.f32 %v5520_v0, %v558_v50 }
 0x119   :  { %v606_v43 = vpop.f32.mrf.mxu0  ;;  %v782_v60 = vpop.f32.mrf.mxu1 }
 0x11a   :  { %v6445_v51 = vadd.f32 %v5532_v31, %v614_v39  ;;  %v607_v54 = vadd.f32 %v606_v43, %v457_v62  ;;  %v427_v62 = vadd.f32 %v6394_v47, %v6396_v52  ;;  %v6470_v31 = vand.u32 4294901760, %v6458_v46 }
 0x11b   :  { %v5513_v58 = vpop.f32.mrf.mxu0  ;;  %v5564_v19 = vpop.f32.mrf.mxu1  ;;  %v1182_v52 = vsub.f32 %v6448_v38, %v6463_v59 }
 0x11c   :  { %v6450_v55 = vadd.f32 %v766_v3, %v607_v54  ;;  %v628_v63 = vadd.f32 %v5513_v58, %v475_v1  ;;  %v703_v1 = vadd.f32 %v702_v5, %v551_v44  ;;  %v572_v26 = vadd.f32 %v5501_v10, %v427_v62 }
 0x11d   :  { %v620_v2 = vpop.f32.mrf.mxu0  ;;  %v1006_v47 = vpop.f32.mrf.mxu1  ;;  %v1192_v61 = vsub.f32 %v6458_v46, %v6470_v31 }
 0x11e   :  { %v6455_v18 = vadd.f32 %v5535_v20, %v628_v63  ;;  %v621_v45 = vadd.f32 %v620_v2, %v469_v8  ;;  %v1172_v8 = vsub.f32 %v6439_v48, %v6453_v15  ;;  %v727_v40 = vadd.f32 %v6404_v13, %v572_v26 }
 0x11f   :  { %v5542_v41 = vpop.f32.mrf.mxu0  ;;  %v6488_v20 = vand.u32 4294901760, %v1182_v52  ;;  %v565_v13 = vadd.f32 %v6410_v14, %v421_v42  ;;  %v5567_v39 = vpop.f32.mrf.mxu1  ;;  %v6495_v56 = vand.u32 4294901760, %v1192_v61  ;;  %v586_v26 = vadd.f32 %v6412_v16, %v6402_v7 }
 0x120   :  { %v6465_v24 = vadd.f32 %v782_v60, %v621_v45  ;;  %v874_v25 = vadd.f32 %v5542_v41, %v711_v17  ;;  %v6477_v10 = vand.u32 4294901760, %v1172_v8 }
 0x121   :  { %v867_v0 = vpop.f32.mrf.mxu0  ;;  %v719_v54 = vadd.f32 %v6406_v9, %v565_v13  ;;  %v1018_v2 = vpop.f32.mrf.mxu1 }
 0x122   :  { %v1013_v28 = vadd.f32 %v5564_v19, %v874_v25  ;;  %v868_v30 = vadd.f32 %v867_v0, %v703_v1 }
 0x123   :  { %v5545_v36 = vpop.f32.mrf.mxu0  ;;  %v5570_v16 = vpop.f32.mrf.mxu1 }
 0x124   :  { %v6474_v32 = vand.u32 4294901760, %v1013_v28  ;;  %v1007_v5 = vadd.f32 %v1006_v47, %v868_v30  ;;  %v886_v6 = vadd.f32 %v5545_v36, %v727_v40  ;;  %v743_v30 = vadd.f32 %v6408_v11, %v586_v26 }
 0x125   :  { %v879_v43 = vpop.f32.mrf.mxu0  ;;  %v1030_v36 = vpop.f32.mrf.mxu1 }
 0x126   :  { %v1229_v3 = vsub.f32 %v1013_v28, %v6474_v32  ;;  %v6482_v57 = vand.u32 4294901760, %v1007_v5  ;;  %5580 = vmatprep.subr.mxu0 %v6474_v32  ;;  %v1025_v49 = vadd.f32 %v5567_v39, %v886_v6  ;;  %v880_v44 = vadd.f32 %v879_v43, %v719_v54 }
 0x127   :  { %5581 = vmatpush3.msra.mxu0 %v6474_v32  ;;  %v5548_v8 = vpop.f32.mrf.mxu0  ;;  %v5573_v43 = vpop.f32.mrf.mxu1 }
 0x128   :  { %v1236_v29 = vsub.f32 %v1007_v5, %v6482_v57  ;;  %5582 = vmatprep.subr.mxu0 %v6482_v57  ;;  %v1230_v53 = vand.u32 4294901760, %v1229_v3  ;;  %v6500_v63 = vand.u32 4294901760, %v1025_v49  ;;  %v1019_v45 = vadd.f32 %v1018_v2, %v880_v44 }
 0x129   :  { %5583 = vmatpush3.msra.mxu0 %v6482_v57  ;;  %v898_v7 = vadd.f32 %v5548_v8, %v743_v30  ;;  %v891_v52 = vpop.f32.mrf.mxu0 }
 0x12a   :  { %5585 = vmatmul.mubr.f32.vlgmr.msra.gmra.mxu0 %v6477_v10  ;;  %5600 = vmatprep.subr.mxu0 %v1229_v3  ;;  %v1231_v50 = vsub.f32 %v1229_v3, %v1230_v53  ;;  %v1237_v14 = vand.u32 4294901760, %v1236_v29  ;;  %v1902_v9 = vsub.f32 %v1025_v49, %v6500_v63  ;;  %v6509_v62 = vand.u32 4294901760, %v1019_v45 }
 0x12b   :  { %5601 = vmatpush3.msra.mxu0 %v1229_v3  ;;  %5587 = vmatprep.mubr.f32.mxu0 %v6488_v20  ;;  %v892_v11 = vadd.f32 %v891_v52, %v6424_v35 }
 0x12c   :  { %5602 = vmatprep.subr.mxu0 %v1236_v29  ;;  %v1232_v58 = vand.u32 4294901760, %v1231_v50  ;;  %v1238_v60 = vsub.f32 %v1236_v29, %v1237_v14  ;;  %v1903_v41 = vand.u32 4294901760, %v1902_v9  ;;  %v1909_v19 = vsub.f32 %v1019_v45, %v6509_v62 }
 0x12d   :  { %5603 = vmatpush3.msra.mxu0 %v1236_v29  ;;  %v1031_v40 = vadd.f32 %v1030_v36, %v892_v11  ;;  %v5551_v29 = vpop.f32.mrf.mxu0 }
 0x12e   :  { %5588 = vmatmul.mubr.f32.gmra.mxu0 %v6495_v56  ;;  %5620 = vmatprep.subr.mxu0 %v1230_v53  ;;  %v1239_v17 = vand.u32 4294901760, %v1238_v60  ;;  %v1904_v1 = vsub.f32 %v1902_v9, %v1903_v41  ;;  %v1910_v25 = vand.u32 4294901760, %v1909_v19 }
 0x12f   :  { %5590 = vmatprep.subr.mxu1 %v1232_v58  ;;  %5604 = vmatprep.mubr.f32.mxu0 %v6375_v22  ;;  %v6556_v35 = vand.u32 4294901760, %v1031_v40  ;;  %v903_v50 = vpop.f32.mrf.mxu0 }
 0x130   :  { %5591 = vmatpush3.msra.mxu1 %v1232_v58  ;;  %v1905_v0 = vand.u32 4294901760, %v1904_v1  ;;  %v1911_v28 = vsub.f32 %v1909_v19, %v1910_v25  ;;  %v1042_v58 = vpop.f32.mrf.mxu1 }
 0x131   :  { %5592 = vmatprep.subr.mxu1 %v1239_v17 }
 0x132   :  { %5593 = vmatpush3.msra.mxu1 %v1239_v17  ;;  %5605 = vmatmul.mubr.f32.vlgmr.msra.gmra.mxu0 %v6439_v48  ;;  %v1912_v47 = vand.u32 4294901760, %v1911_v28  ;;  %v5576_v1 = vpop.f32.mrf.mxu1 }
 0x133   :  { %5595 = vmatmul.mubr.f32.vlgmr.msra.gmra.mxu1 %v6427_v4  ;;  %5610 = vmatprep.subr.mxu1 %v6474_v32 }
 0x134   :  { %5621 = vmatpush3.msra.mxu0 %v1230_v53  ;;  %5611 = vmatpush3.msra.mxu1 %v6474_v32  ;;  %v910_v53 = vadd.f32 %v5551_v29, %v6429_v33  ;;  %v904_v33 = vadd.f32 %v903_v50, %v6436_v34  ;;  %v1054_v28 = vpop.f32.mrf.mxu1 }
 0x135   :  { %5622 = vmatprep.subr.mxu0 %v1237_v14  ;;  %5612 = vmatprep.subr.mxu1 %v6482_v57 }
 0x136   :  { %5623 = vmatpush3.msra.mxu0 %v1237_v14  ;;  %5597 = vmatprep.mubr.f32.mxu1 %v6432_v23  ;;  %v1049_v14 = vadd.f32 %v5573_v43, %v910_v53  ;;  %v1043_v60 = vadd.f32 %v1042_v58, %v904_v33 }
 0x137   :  { %5607 = vmatprep.mubr.f32.mxu0 %v6448_v38  ;;  %5613 = vmatpush3.msra.mxu1 %v6482_v57 }
 0x138   :  { %5640 = vmatprep.subr.mxu0 %v6500_v63  ;;  %5598 = vmatmul.mubr.f32.gmra.mxu1 %v6441_v12  ;;  %v6589_v54 = vand.u32 4294901760, %v1049_v14  ;;  %v6600_v34 = vand.u32 4294901760, %v1043_v60 }
 0x139   :  { %5608 = vmatmul.mubr.f32.gmra.mxu0 %v6458_v46  ;;  %5630 = vmatprep.subr.mxu1 %v6474_v32 }
 0x13a   :  { %5614 = vmatprep.mubr.f32.mxu1 %v6379_v27  ;;  %5624 = vmatprep.mubr.f32.mxu0 %v6372_v21  ;;  %v3248_v44 = vsub.f32 %v1049_v14, %v6589_v54  ;;  %v3255_v2 = vsub.f32 %v1043_v60, %v6600_v34 }
 0x13c   :  { %5615 = vmatmul.mubr.f32.vlgmr.msra.gmra.mxu1 %v6453_v15  ;;  %v3256_v45 = vand.u32 4294901760, %v3255_v2 }
 0x13d   :  { %5625 = vmatmul.mubr.f32.vlgmr.msra.gmra.mxu0 %v6427_v4  ;;  %5631 = vmatpush3.msra.mxu1 %v6474_v32  ;;  %v1037_v32 = vadd.f32 %v5570_v16, %v898_v7 }
 0x13e   :  { %5641 = vmatpush3.msra.mxu0 %v6500_v63  ;;  %5632 = vmatprep.subr.mxu1 %v6482_v57 }
 0x13f   :  { %5642 = vmatprep.subr.mxu0 %v6509_v62  ;;  %5633 = vmatpush3.msra.mxu1 %v6482_v57  ;;  %v6545_v5 = vand.u32 4294901760, %v1037_v32  ;;  %v2582_v57 = vsub.f32 %v1031_v40, %v6556_v35 }
 0x140   :  { %5643 = vmatpush3.msra.mxu0 %v6509_v62  ;;  %5617 = vmatprep.mubr.f32.mxu1 %v6463_v59 }
 0x141   :  { %5627 = vmatprep.mubr.f32.mxu0 %v6432_v23  ;;  %5650 = vmatprep.subr.mxu1 %v1905_v0  ;;  %v2575_v42 = vsub.f32 %v1037_v32, %v6545_v5  ;;  %v2583_v6 = vand.u32 4294901760, %v2582_v57 }
 0x142   :  { %5660 = vmatprep.subr.mxu0 %v1902_v9  ;;  %5618 = vmatmul.mubr.f32.gmra.mxu1 %v6470_v31 }
 0x143   :  { %5628 = vmatmul.mubr.f32.gmra.mxu0 %v6441_v12  ;;  %5634 = vmatprep.mubr.f32.mxu1 %v6372_v21  ;;  %v2576_v3 = vand.u32 4294901760, %v2575_v42  ;;  %v2584_v39 = vsub.f32 %v2582_v57, %v2583_v6 }
 0x144   :  { %5644 = vmatprep.mubr.f32.mxu0 %v6383_v37 }
 0x145   :  { %v2577_v61 = vsub.f32 %v2575_v42, %v2576_v3  ;;  %v2585_v49 = vand.u32 4294901760, %v2584_v39 }
 0x146   :  { %5635 = vmatmul.mubr.f32.vlgmr.msra.gmra.mxu1 %v6427_v4 }
 0x147   :  { %5645 = vmatmul.mubr.f32.vlgmr.msra.gmra.mxu0 %v6477_v10  ;;  %5651 = vmatpush3.msra.mxu1 %v1905_v0  ;;  %v2578_v13 = vand.u32 4294901760, %v2577_v61 }
 0x148   :  { %5661 = vmatpush3.msra.mxu0 %v1902_v9  ;;  %5652 = vmatprep.subr.mxu1 %v1912_v47 }
 0x149   :  { %5662 = vmatprep.subr.mxu0 %v1909_v19  ;;  %5653 = vmatpush3.msra.mxu1 %v1912_v47 }
 0x14a   :  { %5663 = vmatpush3.msra.mxu0 %v1909_v19  ;;  %5637 = vmatprep.mubr.f32.mxu1 %v6432_v23 }
 0x14b   :  { %5647 = vmatprep.mubr.f32.mxu0 %v6488_v20  ;;  %5670 = vmatprep.subr.mxu1 %v6500_v63 }
 0x14c   :  { %5680 = vmatprep.subr.mxu0 %v1903_v41  ;;  %5638 = vmatmul.mubr.f32.gmra.mxu1 %v6441_v12 }
 0x14d   :  { %5648 = vmatmul.mubr.f32.gmra.mxu0 %v6495_v56  ;;  %5654 = vmatprep.mubr.f32.mxu1 %v6372_v21 }
 0x14e   :  { %5664 = vmatprep.mubr.f32.mxu0 %v6375_v22 }
 0x150   :  { %5655 = vmatmul.mubr.f32.vlgmr.msra.gmra.mxu1 %v6427_v4 }
 0x151   :  { %5665 = vmatmul.mubr.f32.vlgmr.msra.gmra.mxu0 %v6439_v48  ;;  %5671 = vmatpush3.msra.mxu1 %v6500_v63 }
 0x152   :  { %5681 = vmatpush3.msra.mxu0 %v1903_v41  ;;  %5672 = vmatprep.subr.mxu1 %v6509_v62  ;;  %v3257_v41 = vsub.f32 %v3255_v2, %v3256_v45 }
 0x153   :  { %5682 = vmatprep.subr.mxu0 %v1910_v25  ;;  %5673 = vmatpush3.msra.mxu1 %v6509_v62 }
 0x154   :  { %5683 = vmatpush3.msra.mxu0 %v1910_v25  ;;  %5657 = vmatprep.mubr.f32.mxu1 %v6432_v23  ;;  %v3258_v25 = vand.u32 4294901760, %v3257_v41 }
 0x155   :  { %5667 = vmatprep.mubr.f32.mxu0 %v6448_v38  ;;  %5690 = vmatprep.subr.mxu1 %v6500_v63 }
 0x156   :  { %5700 = vmatprep.subr.mxu0 %v6545_v5  ;;  %5658 = vmatmul.mubr.f32.gmra.mxu1 %v6441_v12 }
 0x157   :  { %5668 = vmatmul.mubr.f32.gmra.mxu0 %v6458_v46  ;;  %5674 = vmatprep.mubr.f32.mxu1 %v6379_v27 }
 0x158   :  { %5684 = vmatprep.mubr.f32.mxu0 %v6372_v21 }
 0x15a   :  { %5675 = vmatmul.mubr.f32.vlgmr.msra.gmra.mxu1 %v6453_v15 }
 0x15b   :  { %5685 = vmatmul.mubr.f32.vlgmr.msra.gmra.mxu0 %v6427_v4  ;;  %5691 = vmatpush3.msra.mxu1 %v6500_v63  ;;  %v3249_v63 = vand.u32 4294901760, %v3248_v44 }
 0x15c   :  { %5701 = vmatpush3.msra.mxu0 %v6545_v5  ;;  %5692 = vmatprep.subr.mxu1 %v6509_v62 }
 0x15d   :  { %5702 = vmatprep.subr.mxu0 %v6556_v35  ;;  %5693 = vmatpush3.msra.mxu1 %v6509_v62  ;;  %v3250_v17 = vsub.f32 %v3248_v44, %v3249_v63  ;;  %v5554_v62 = vpop.f32.mrf.mxu0 }
 0x15e   :  { %5703 = vmatpush3.msra.mxu0 %v6556_v35  ;;  %5677 = vmatprep.mubr.f32.mxu1 %v6463_v59  ;;  %v922_v19 = vadd.f32 %v5554_v62, %v6445_v51 }
 0x15f   :  { %5687 = vmatprep.mubr.f32.mxu0 %v6432_v23  ;;  %5710 = vmatprep.subr.mxu1 %v2578_v13  ;;  %v3251_v9 = vand.u32 4294901760, %v3250_v17  ;;  %v915_v26 = vpop.f32.mrf.mxu0 }
 0x160   :  { %5720 = vmatprep.subr.mxu0 %v2575_v42  ;;  %5678 = vmatmul.mubr.f32.gmra.mxu1 %v6470_v31  ;;  %v1061_v0 = vadd.f32 %v5576_v1, %v922_v19  ;;  %v916_v51 = vadd.f32 %v915_v26, %v6450_v55 }
 0x161   :  { %5688 = vmatmul.mubr.f32.gmra.mxu0 %v6441_v12  ;;  %5694 = vmatprep.mubr.f32.mxu1 %v6372_v21 }
 0x162   :  { %5704 = vmatprep.mubr.f32.mxu0 %v6383_v37  ;;  %v6633_v8 = vand.u32 4294901760, %v1061_v0  ;;  %v1055_v30 = vadd.f32 %v1054_v28, %v916_v51 }
 0x164   :  { %5695 = vmatmul.mubr.f32.vlgmr.msra.gmra.mxu1 %v6427_v4  ;;  %v3921_v7 = vsub.f32 %v1061_v0, %v6633_v8  ;;  %v6644_v55 = vand.u32 4294901760, %v1055_v30 }
 0x165   :  { %5705 = vmatmul.mubr.f32.vlgmr.msra.gmra.mxu0 %v6477_v10  ;;  %5711 = vmatpush3.msra.mxu1 %v2578_v13 }
 0x166   :  { %5721 = vmatpush3.msra.mxu0 %v2575_v42  ;;  %5712 = vmatprep.subr.mxu1 %v2585_v49  ;;  %v3922_v16 = vand.u32 4294901760, %v3921_v7  ;;  %v3928_v47 = vsub.f32 %v1055_v30, %v6644_v55  ;;  %v5579_v42 = vpop.f32.mrf.mxu1 }
 0x167   :  { %5722 = vmatprep.subr.mxu0 %v2582_v57  ;;  %5713 = vmatpush3.msra.mxu1 %v2585_v49 }
 0x168   :  { %5723 = vmatpush3.msra.mxu0 %v2582_v57  ;;  %5697 = vmatprep.mubr.f32.mxu1 %v6432_v23  ;;  %v3923_v52 = vsub.f32 %v3921_v7, %v3922_v16  ;;  %v3929_v32 = vand.u32 4294901760, %v3928_v47 }
 0x169   :  { %5707 = vmatprep.mubr.f32.mxu0 %v6488_v20  ;;  %5730 = vmatprep.subr.mxu1 %v6545_v5 }
 0x16a   :  { %5740 = vmatprep.subr.mxu0 %v2576_v3  ;;  %5698 = vmatmul.mubr.f32.gmra.mxu1 %v6441_v12  ;;  %v3924_v11 = vand.u32 4294901760, %v3923_v52  ;;  %v3930_v36 = vsub.f32 %v3928_v47, %v3929_v32 }
 0x16b   :  { %5708 = vmatmul.mubr.f32.gmra.mxu0 %v6495_v56  ;;  %5714 = vmatprep.mubr.f32.mxu1 %v6372_v21 }
 0x16c   :  { %5724 = vmatprep.mubr.f32.mxu0 %v6375_v22 }
 0x16e   :  { %5715 = vmatmul.mubr.f32.vlgmr.msra.gmra.mxu1 %v6427_v4 }
 0x16f   :  { %5725 = vmatmul.mubr.f32.vlgmr.msra.gmra.mxu0 %v6439_v48  ;;  %5731 = vmatpush3.msra.mxu1 %v6545_v5 }
 0x170   :  { %5741 = vmatpush3.msra.mxu0 %v2576_v3  ;;  %5732 = vmatprep.subr.mxu1 %v6556_v35 }
 0x171   :  { %5742 = vmatprep.subr.mxu0 %v2583_v6  ;;  %5733 = vmatpush3.msra.mxu1 %v6556_v35 }
 0x172   :  { %5743 = vmatpush3.msra.mxu0 %v2583_v6  ;;  %5717 = vmatprep.mubr.f32.mxu1 %v6432_v23  ;;  %v1066_v6 = vpop.f32.mrf.mxu1 }
 0x173   :  { %5727 = vmatprep.mubr.f32.mxu0 %v6448_v38  ;;  %5750 = vmatprep.subr.mxu1 %v6545_v5 }
 0x174   :  { %5760 = vmatprep.subr.mxu0 %v6589_v54  ;;  %5718 = vmatmul.mubr.f32.gmra.mxu1 %v6441_v12 }
 0x175   :  { %5728 = vmatmul.mubr.f32.gmra.mxu0 %v6458_v46  ;;  %5734 = vmatprep.mubr.f32.mxu1 %v6379_v27 }
 0x176   :  { %5744 = vmatprep.mubr.f32.mxu0 %v6372_v21 }
 0x178   :  { %5735 = vmatmul.mubr.f32.vlgmr.msra.gmra.mxu1 %v6453_v15 }
 0x179   :  { %5745 = vmatmul.mubr.f32.vlgmr.msra.gmra.mxu0 %v6427_v4  ;;  %5751 = vmatpush3.msra.mxu1 %v6545_v5  ;;  %v5557_v5 = vpop.f32.mrf.mxu0 }
 0x17a   :  { %5761 = vmatpush3.msra.mxu0 %v6589_v54  ;;  %5752 = vmatprep.subr.mxu1 %v6556_v35  ;;  %v934_v40 = vadd.f32 %v5557_v5, %v6455_v18 }
 0x17b   :  { %5762 = vmatprep.subr.mxu0 %v6600_v34  ;;  %5753 = vmatpush3.msra.mxu1 %v6556_v35  ;;  %v3931_v35 = vand.u32 4294901760, %v3930_v36  ;;  %v927_v3 = vpop.f32.mrf.mxu0 }
 0x17c   :  { %5763 = vmatpush3.msra.mxu0 %v6600_v34  ;;  %5737 = vmatprep.mubr.f32.mxu1 %v6463_v59  ;;  %v1073_v57 = vadd.f32 %v5579_v42, %v934_v40  ;;  %v928_v18 = vadd.f32 %v927_v3, %v6465_v24 }
 0x17d   :  { %5747 = vmatprep.mubr.f32.mxu0 %v6432_v23  ;;  %5770 = vmatprep.subr.mxu1 %v3251_v9 }
 0x17e   :  { %5780 = vmatprep.subr.mxu0 %v3248_v44  ;;  %5738 = vmatmul.mubr.f32.gmra.mxu1 %v6470_v31  ;;  %v6677_v61 = vand.u32 4294901760, %v1073_v57  ;;  %v1067_v13 = vadd.f32 %v1066_v6, %v928_v18 }
 0x17f   :  { %5748 = vmatmul.mubr.f32.gmra.mxu0 %v6441_v12  ;;  %5754 = vmatprep.mubr.f32.mxu1 %v6372_v21 }
 0x180   :  { %5764 = vmatprep.mubr.f32.mxu0 %v6383_v37  ;;  %v4594_v29 = vsub.f32 %v1073_v57, %v6677_v61  ;;  %v6688_v24 = vand.u32 4294901760, %v1067_v13 }
 0x182   :  { %5755 = vmatmul.mubr.f32.vlgmr.msra.gmra.mxu1 %v6427_v4  ;;  %v4595_v39 = vand.u32 4294901760, %v4594_v29  ;;  %v4601_v53 = vsub.f32 %v1067_v13, %v6688_v24 }
 0x183   :  { %5765 = vmatmul.mubr.f32.vlgmr.msra.gmra.mxu0 %v6477_v10  ;;  %5771 = vmatpush3.msra.mxu1 %v3251_v9 }
 0x184   :  { %5781 = vmatpush3.msra.mxu0 %v3248_v44  ;;  %5772 = vmatprep.subr.mxu1 %v3258_v25  ;;  %v4596_v43 = vsub.f32 %v4594_v29, %v4595_v39  ;;  %v4602_v49 = vand.u32 4294901760, %v4601_v53 }
 0x185   :  { %5782 = vmatprep.subr.mxu0 %v3255_v2  ;;  %5773 = vmatpush3.msra.mxu1 %v3258_v25 }
 0x186   :  { %5783 = vmatpush3.msra.mxu0 %v3255_v2  ;;  %5757 = vmatprep.mubr.f32.mxu1 %v6432_v23  ;;  %v4597_v50 = vand.u32 4294901760, %v4596_v43  ;;  %v4603_v14 = vsub.f32 %v4601_v53, %v4602_v49 }
 0x187   :  { %5767 = vmatprep.mubr.f32.mxu0 %v6488_v20  ;;  %5790 = vmatprep.subr.mxu1 %v6589_v54 }
 0x188   :  { %5800 = vmatprep.subr.mxu0 %v3249_v63  ;;  %5758 = vmatmul.mubr.f32.gmra.mxu1 %v6441_v12  ;;  %v4604_v33 = vand.u32 4294901760, %v4603_v14 }
 0x189   :  { %5768 = vmatmul.mubr.f32.gmra.mxu0 %v6495_v56  ;;  %5774 = vmatprep.mubr.f32.mxu1 %v6372_v21 }
 0x18a   :  { %5784 = vmatprep.mubr.f32.mxu0 %v6375_v22 }
 0x18c   :  { %5775 = vmatmul.mubr.f32.vlgmr.msra.gmra.mxu1 %v6427_v4 }
 0x18d   :  { %5785 = vmatmul.mubr.f32.vlgmr.msra.gmra.mxu0 %v6439_v48  ;;  %5791 = vmatpush3.msra.mxu1 %v6589_v54 }
 0x18e   :  { %5801 = vmatpush3.msra.mxu0 %v3249_v63  ;;  %5792 = vmatprep.subr.mxu1 %v6600_v34 }
 0x18f   :  { %5802 = vmatprep.subr.mxu0 %v3256_v45  ;;  %5793 = vmatpush3.msra.mxu1 %v6600_v34 }
 0x190   :  { %5803 = vmatpush3.msra.mxu0 %v3256_v45  ;;  %5777 = vmatprep.mubr.f32.mxu1 %v6432_v23 }
 0x191   :  { %5787 = vmatprep.mubr.f32.mxu0 %v6448_v38  ;;  %5810 = vmatprep.subr.mxu1 %v6589_v54 }
 0x192   :  { %5820 = vmatprep.subr.mxu0 %v6633_v8  ;;  %5778 = vmatmul.mubr.f32.gmra.mxu1 %v6441_v12 }
 0x193   :  { %5788 = vmatmul.mubr.f32.gmra.mxu0 %v6458_v46  ;;  %5794 = vmatprep.mubr.f32.mxu1 %v6379_v27 }
 0x194   :  { %5804 = vmatprep.mubr.f32.mxu0 %v6372_v21 }
 0x196   :  { %5795 = vmatmul.mubr.f32.vlgmr.msra.gmra.mxu1 %v6453_v15 }
 0x197   :  { %5805 = vmatmul.mubr.f32.vlgmr.msra.gmra.mxu0 %v6427_v4  ;;  %5811 = vmatpush3.msra.mxu1 %v6589_v54 }
 0x198   :  { %5821 = vmatpush3.msra.mxu0 %v6633_v8  ;;  %5812 = vmatprep.subr.mxu1 %v6600_v34 }
 0x199   :  { %5822 = vmatprep.subr.mxu0 %v6644_v55  ;;  %5813 = vmatpush3.msra.mxu1 %v6600_v34 }
 0x19a   :  { %5823 = vmatpush3.msra.mxu0 %v6644_v55  ;;  %5797 = vmatprep.mubr.f32.mxu1 %v6463_v59 }
 0x19b   :  { %5807 = vmatprep.mubr.f32.mxu0 %v6432_v23  ;;  %5830 = vmatprep.subr.mxu1 %v3924_v11 }
 0x19c   :  { %5840 = vmatprep.subr.mxu0 %v3921_v7  ;;  %5798 = vmatmul.mubr.f32.gmra.mxu1 %v6470_v31 }
 0x19d   :  { %5808 = vmatmul.mubr.f32.gmra.mxu0 %v6441_v12  ;;  %5814 = vmatprep.mubr.f32.mxu1 %v6372_v21 }
 0x19e   :  { %5824 = vmatprep.mubr.f32.mxu0 %v6383_v37 }
 0x1a0   :  { %5815 = vmatmul.mubr.f32.vlgmr.msra.gmra.mxu1 %v6427_v4 }
 0x1a1   :  { %5825 = vmatmul.mubr.f32.vlgmr.msra.gmra.mxu0 %v6477_v10  ;;  %5831 = vmatpush3.msra.mxu1 %v3924_v11 }
 0x1a2   :  { %5841 = vmatpush3.msra.mxu0 %v3921_v7  ;;  %5832 = vmatprep.subr.mxu1 %v3931_v35 }
 0x1a3   :  { %5842 = vmatprep.subr.mxu0 %v3928_v47  ;;  %5833 = vmatpush3.msra.mxu1 %v3931_v35 }
 0x1a4   :  { %5843 = vmatpush3.msra.mxu0 %v3928_v47  ;;  %5817 = vmatprep.mubr.f32.mxu1 %v6432_v23 }
 0x1a5   :  { %5827 = vmatprep.mubr.f32.mxu0 %v6488_v20  ;;  %5850 = vmatprep.subr.mxu1 %v6633_v8 }
 0x1a6   :  { %5860 = vmatprep.subr.mxu0 %v3922_v16  ;;  %5818 = vmatmul.mubr.f32.gmra.mxu1 %v6441_v12 }
 0x1a7   :  { %5828 = vmatmul.mubr.f32.gmra.mxu0 %v6495_v56  ;;  %5834 = vmatprep.mubr.f32.mxu1 %v6372_v21 }
 0x1a8   :  { %5844 = vmatprep.mubr.f32.mxu0 %v6375_v22 }
 0x1aa   :  { %5835 = vmatmul.mubr.f32.vlgmr.msra.gmra.mxu1 %v6427_v4 }
 0x1ab   :  { %5845 = vmatmul.mubr.f32.vlgmr.msra.gmra.mxu0 %v6439_v48  ;;  %5851 = vmatpush3.msra.mxu1 %v6633_v8 }
 0x1ac   :  { %5861 = vmatpush3.msra.mxu0 %v3922_v16  ;;  %5852 = vmatprep.subr.mxu1 %v6644_v55 }
 0x1ad   :  { %5862 = vmatprep.subr.mxu0 %v3929_v32  ;;  %5853 = vmatpush3.msra.mxu1 %v6644_v55 }
 0x1ae   :  { %5863 = vmatpush3.msra.mxu0 %v3929_v32  ;;  %5837 = vmatprep.mubr.f32.mxu1 %v6432_v23 }
 0x1af   :  { %5847 = vmatprep.mubr.f32.mxu0 %v6448_v38  ;;  %5870 = vmatprep.subr.mxu1 %v6633_v8 }
 0x1b0   :  { %5880 = vmatprep.subr.mxu0 %v6677_v61  ;;  %5838 = vmatmul.mubr.f32.gmra.mxu1 %v6441_v12 }
 0x1b1   :  { %5848 = vmatmul.mubr.f32.gmra.mxu0 %v6458_v46  ;;  %5854 = vmatprep.mubr.f32.mxu1 %v6379_v27 }
 0x1b2   :  { %5864 = vmatprep.mubr.f32.mxu0 %v6372_v21 }
 0x1b4   :  { %5855 = vmatmul.mubr.f32.vlgmr.msra.gmra.mxu1 %v6453_v15 }
 0x1b5   :  { %5865 = vmatmul.mubr.f32.vlgmr.msra.gmra.mxu0 %v6427_v4  ;;  %5871 = vmatpush3.msra.mxu1 %v6633_v8 }
 0x1b6   :  { %5881 = vmatpush3.msra.mxu0 %v6677_v61  ;;  %5872 = vmatprep.subr.mxu1 %v6644_v55 }
 0x1b7   :  { %5882 = vmatprep.subr.mxu0 %v6688_v24  ;;  %5873 = vmatpush3.msra.mxu1 %v6644_v55 }
 0x1b8   :  { %5883 = vmatpush3.msra.mxu0 %v6688_v24  ;;  %5857 = vmatprep.mubr.f32.mxu1 %v6463_v59 }
 0x1b9   :  { %5867 = vmatprep.mubr.f32.mxu0 %v6432_v23  ;;  %5890 = vmatprep.subr.mxu1 %v4597_v50 }
 0x1ba   :  { %5900 = vmatprep.subr.mxu0 %v4594_v29  ;;  %5858 = vmatmul.mubr.f32.gmra.mxu1 %v6470_v31 }
 0x1bb   :  { %5868 = vmatmul.mubr.f32.gmra.mxu0 %v6441_v12  ;;  %5874 = vmatprep.mubr.f32.mxu1 %v6372_v21 }
 0x1bc   :  { %5884 = vmatprep.mubr.f32.mxu0 %v6383_v37 }
 0x1be   :  { %5875 = vmatmul.mubr.f32.vlgmr.msra.gmra.mxu1 %v6427_v4 }
 0x1bf   :  { %5885 = vmatmul.mubr.f32.vlgmr.msra.gmra.mxu0 %v6477_v10  ;;  %5891 = vmatpush3.msra.mxu1 %v4597_v50 }
 0x1c0   :  { %5901 = vmatpush3.msra.mxu0 %v4594_v29  ;;  %5892 = vmatprep.subr.mxu1 %v4604_v33 }
 0x1c1   :  { %5902 = vmatprep.subr.mxu0 %v4601_v53  ;;  %5893 = vmatpush3.msra.mxu1 %v4604_v33 }
 0x1c2   :  { %5903 = vmatpush3.msra.mxu0 %v4601_v53  ;;  %5877 = vmatprep.mubr.f32.mxu1 %v6432_v23 }
 0x1c3   :  { %5887 = vmatprep.mubr.f32.mxu0 %v6488_v20  ;;  %5910 = vmatprep.subr.mxu1 %v6677_v61 }
 0x1c4   :  { %5920 = vmatprep.subr.mxu0 %v4595_v39  ;;  %5878 = vmatmul.mubr.f32.gmra.mxu1 %v6441_v12 }
 0x1c5   :  { %5888 = vmatmul.mubr.f32.gmra.mxu0 %v6495_v56  ;;  %5894 = vmatprep.mubr.f32.mxu1 %v6372_v21 }
 0x1c6   :  { %5904 = vmatprep.mubr.f32.mxu0 %v6375_v22 }
 0x1c8   :  { %5895 = vmatmul.mubr.f32.vlgmr.msra.gmra.mxu1 %v6427_v4 }
 0x1c9   :  { %5905 = vmatmul.mubr.f32.vlgmr.msra.gmra.mxu0 %v6439_v48  ;;  %5911 = vmatpush3.msra.mxu1 %v6677_v61 }
 0x1ca   :  { %5921 = vmatpush3.msra.mxu0 %v4595_v39  ;;  %5912 = vmatprep.subr.mxu1 %v6688_v24 }
 0x1cb   :  { %5922 = vmatprep.subr.mxu0 %v4602_v49  ;;  %5913 = vmatpush3.msra.mxu1 %v6688_v24 }
 0x1cc   :  { %5923 = vmatpush3.msra.mxu0 %v4602_v49  ;;  %5897 = vmatprep.mubr.f32.mxu1 %v6432_v23 }
 0x1cd   :  { %5930 = vmatprep.subr.mxu1 %v6677_v61  ;;  %5898 = vmatmul.mubr.f32.gmra.mxu1 %v6441_v12 }
 0x1ce   :  { %5914 = vmatprep.mubr.f32.mxu1 %v6379_v27  ;;  %5907 = vmatprep.mubr.f32.mxu0 %v6448_v38 }
 0x1cf   :  { %5908 = vmatmul.mubr.f32.gmra.mxu0 %v6458_v46 }
 0x1d0   :  { %5924 = vmatprep.mubr.f32.mxu0 %v6372_v21 }
 0x1d1   :  { %5915 = vmatmul.mubr.f32.vlgmr.msra.gmra.mxu1 %v6453_v15 }
 0x1d2   :  { %5931 = vmatpush3.msra.mxu1 %v6677_v61  ;;  %5917 = vmatprep.mubr.f32.mxu1 %v6463_v59 }
 0x1d3   :  { %5932 = vmatprep.subr.mxu1 %v6688_v24  ;;  %5925 = vmatmul.mubr.f32.vlgmr.msra.gmra.mxu0 %v6427_v4 }
 0x1d4   :  { %5933 = vmatpush3.msra.mxu1 %v6688_v24  ;;  %5927 = vmatprep.mubr.f32.mxu0 %v6432_v23 }
 0x1d5   :  { %5918 = vmatmul.mubr.f32.gmra.mxu1 %v6470_v31 }
 0x1d6   :  { %5934 = vmatprep.mubr.f32.mxu1 %v6372_v21 }
 0x1d7   :  { %5928 = vmatmul.mubr.f32.gmra.mxu0 %v6441_v12 }
 0x1d9   :  { %5935 = vmatmul.mubr.f32.vlgmr.msra.gmra.mxu1 %v6427_v4 }
 0x1da   :  { %5937 = vmatprep.mubr.f32.mxu1 %v6432_v23 }
 0x1dd   :  { %5938 = vmatmul.mubr.f32.gmra.mxu1 %v6441_v12 }
 0x1ea   :  { %v5586_v22 = vpop.f32.mrf.mxu0 }
 0x1ec   :  { %v1165_v27 = vpop.f32.mrf.mxu0 }
 0x1ee   :  { %v5589_v37 = vpop.f32.mrf.mxu0 }
 0x1f0   :  { %v1185_v48 = vpop.f32.mrf.mxu0 }
 0x1f2   :  { %v5606_v38 = vpop.f32.mrf.mxu0 }
 0x1f3   :  { %v5596_v15 = vpop.f32.mrf.mxu1 }
 0x1f4   :  { %v1283_v46 = vadd.f32 %v5596_v15, %v5586_v22  ;;  %v1370_v10 = vpop.f32.mrf.mxu0 }
 0x1f5   :  { %v1276_v59 = vpop.f32.mrf.mxu1 }
 0x1f6   :  { %v1277_v31 = vadd.f32 %v1276_v59, %v1165_v27  ;;  %v1378_v20 = vadd.f32 %v5606_v38, %v1283_v46 }
 0x1f8   :  { %v5599_v21 = vpop.f32.mrf.mxu1  ;;  %v1371_v56 = vadd.f32 %v1370_v10, %v1277_v31 }
 0x1f9   :  { %v5609_v54 = vpop.f32.mrf.mxu0  ;;  %v1295_v17 = vadd.f32 %v5599_v21, %v5589_v37 }
 0x1fa   :  { %v1288_v58 = vpop.f32.mrf.mxu1 }
 0x1fb   :  { %v1384_v4 = vpop.f32.mrf.mxu0  ;;  %v1289_v19 = vadd.f32 %v1288_v58, %v1185_v48  ;;  %v1392_v1 = vadd.f32 %v5609_v54, %v1295_v17 }
 0x1fc   :  { %v5616_v60 = vpop.f32.mrf.mxu1 }
 0x1fd   :  { %v1475_v23 = vadd.f32 %v5616_v60, %v1378_v20  ;;  %v5626_v44 = vpop.f32.mrf.mxu0  ;;  %v1385_v30 = vadd.f32 %v1384_v4, %v1289_v19 }
 0x1fe   :  { %v1466_v12 = vpop.f32.mrf.mxu1 }
 0x1ff   :  { %v1467_v34 = vadd.f32 %v1466_v12, %v1371_v56  ;;  %v1574_v63 = vadd.f32 %v5626_v44, %v1475_v23  ;;  %v1567_v2 = vpop.f32.mrf.mxu0 }
 0x201   :  { %v1568_v45 = vadd.f32 %v1567_v2, %v1467_v34 }
 0x202   :  { %v5619_v9 = vpop.f32.mrf.mxu1 }
 0x203   :  { %v5629_v62 = vpop.f32.mrf.mxu0  ;;  %v1491_v0 = vadd.f32 %v5619_v9, %v1392_v1 }
 0x204   :  { %v1482_v41 = vpop.f32.mrf.mxu1 }
 0x205   :  { %v1579_v25 = vpop.f32.mrf.mxu0  ;;  %v1483_v16 = vadd.f32 %v1482_v41, %v1385_v30  ;;  %v1586_v47 = vadd.f32 %v5629_v62, %v1491_v0 }
 0x206   :  { %v5636_v26 = vpop.f32.mrf.mxu1 }
 0x207   :  { %v6747_v51 = vadd.f32 %v5636_v26, %v1574_v63  ;;  %v5646_v8 = vpop.f32.mrf.mxu0  ;;  %v1580_v36 = vadd.f32 %v1579_v25, %v1483_v16 }
 0x208   :  { %v1658_v28 = vpop.f32.mrf.mxu1 }
 0x209   :  { %v6749_v7 = vadd.f32 %v1658_v28, %v1568_v45  ;;  %v1838_v55 = vpop.f32.mrf.mxu0 }
 0x20c   :  { %v5639_v52 = vpop.f32.mrf.mxu1 }
 0x20d   :  { %v6751_v32 = vadd.f32 %v5639_v52, %v1586_v47  ;;  %v5649_v11 = vpop.f32.mrf.mxu0 }
 0x20e   :  { %v1670_v5 = vpop.f32.mrf.mxu1 }
 0x20f   :  { %1692 = vrot.lane.b32.xlu0 %v6751_v32, %s6089_s4  ;;  %v1858_v40 = vpop.f32.mrf.mxu0  ;;  %v6755_v35 = vadd.f32 %v1670_v5, %v1580_v36 }
 0x210   :  { %v5656_v42 = vpop.f32.mrf.mxu1 }
 0x211   :  { %v1956_v3 = vadd.f32 %v5656_v42, %v5646_v8  ;;  %v5666_v57 = vpop.f32.mrf.mxu0 }
 0x212   :  { %v1949_v18 = vpop.f32.mrf.mxu1 }
 0x213   :  { %v1950_v61 = vadd.f32 %v1949_v18, %v1838_v55  ;;  %1690 = vrot.lane.b32.xlu0 %v6755_v35, %s6089_s4  ;;  %v2051_v6 = vadd.f32 %v5666_v57, %v1956_v3  ;;  %v2043_v13 = vpop.f32.mrf.mxu0 }
 0x215   :  { %v2044_v29 = vadd.f32 %v2043_v13, %v1950_v61 }
 0x216   :  { %v5659_v24 = vpop.f32.mrf.mxu1 }
 0x217   :  { %v5669_v39 = vpop.f32.mrf.mxu0  ;;  %v1968_v48 = vadd.f32 %v5659_v24, %v5649_v11 }
 0x218   :  { %v1961_v53 = vpop.f32.mrf.mxu1 }
 0x219   :  { %v2057_v43 = vpop.f32.mrf.mxu0  ;;  %v1962_v10 = vadd.f32 %v1961_v53, %v1858_v40  ;;  %v2065_v31 = vadd.f32 %v5669_v39, %v1968_v48 }
 0x21a   :  { %v5676_v49 = vpop.f32.mrf.mxu1 }
 0x21b   :  { %v2148_v50 = vadd.f32 %v5676_v49, %v2051_v6  ;;  %v5686_v14 = vpop.f32.mrf.mxu0  ;;  %v2058_v60 = vadd.f32 %v2057_v43, %v1962_v10 }
 0x21c   :  { %v2139_v33 = vpop.f32.mrf.mxu1 }
 0x21d   :  { %v2140_v22 = vadd.f32 %v2139_v33, %v2044_v29  ;;  %v2247_v27 = vadd.f32 %v5686_v14, %v2148_v50  ;;  %v2240_v37 = vpop.f32.mrf.mxu0 }
 0x21f   :  { %v2241_v38 = vadd.f32 %v2240_v37, %v2140_v22 }
 0x220   :  { %v5679_v15 = vpop.f32.mrf.mxu1 }
 0x221   :  { %v5689_v46 = vpop.f32.mrf.mxu0  ;;  %v2164_v56 = vadd.f32 %v5679_v15, %v2065_v31 }
 0x222   :  { %v2155_v59 = vpop.f32.mrf.mxu1 }
 0x223   :  { %v2252_v20 = vpop.f32.mrf.mxu0  ;;  %v2156_v12 = vadd.f32 %v2155_v59, %v2058_v60  ;;  %v2259_v34 = vadd.f32 %v5689_v46, %v2164_v56 }
 0x224   :  { %v5696_v21 = vpop.f32.mrf.mxu1 }
 0x225   :  { %v6759_v54 = vadd.f32 %v5696_v21, %v2247_v27  ;;  %v5706_v58 = vpop.f32.mrf.mxu0  ;;  %v2253_v9 = vadd.f32 %v2252_v20, %v2156_v12 }
 0x226   :  { %v2331_v4 = vpop.f32.mrf.mxu1 }
 0x227   :  { %v6761_v23 = vadd.f32 %v2331_v4, %v2241_v38  ;;  %v2511_v44 = vpop.f32.mrf.mxu0 }
 0x22a   :  { %v5699_v63 = vpop.f32.mrf.mxu1 }
 0x22b   :  { %v6763_v2 = vadd.f32 %v5699_v63, %v2259_v34  ;;  %v5709_v17 = vpop.f32.mrf.mxu0 }
 0x22c   :  { %v2343_v45 = vpop.f32.mrf.mxu1 }
 0x22d   :  { %2365 = vrot.lane.b32.xlu1 %v6763_v2, %s6089_s4  ;;  %v2531_v62 = vpop.f32.mrf.mxu0  ;;  %v6767_v19 = vadd.f32 %v2343_v45, %v2253_v9 }
 0x22e   :  { %v5716_v41 = vpop.f32.mrf.mxu1 }
 0x22f   :  { %v2629_v1 = vadd.f32 %v5716_v41, %v5706_v58  ;;  %v5726_v25 = vpop.f32.mrf.mxu0 }
 0x230   :  { %v2622_v26 = vpop.f32.mrf.mxu1 }
 0x231   :  { %v2623_v0 = vadd.f32 %v2622_v26, %v2511_v44  ;;  %2363 = vrot.lane.b32.xlu1 %v6767_v19, %s6089_s4  ;;  %v2724_v8 = vadd.f32 %v5726_v25, %v2629_v1  ;;  %v2716_v28 = vpop.f32.mrf.mxu0 }
 0x233   :  { %v2717_v30 = vadd.f32 %v2716_v28, %v2623_v0 }
 0x234   :  { %v5719_v55 = vpop.f32.mrf.mxu1 }
 0x235   :  { %v5729_v16 = vpop.f32.mrf.mxu0  ;;  %v2641_v18 = vadd.f32 %v5719_v55, %v5709_v17 }
 0x236   :  { %v2634_v47 = vpop.f32.mrf.mxu1 }
 0x237   :  { %v2730_v52 = vpop.f32.mrf.mxu0  ;;  %v2635_v13 = vadd.f32 %v2634_v47, %v2531_v62  ;;  %v2738_v39 = vadd.f32 %v5729_v16, %v2641_v18 }
 0x238   :  { %v5736_v11 = vpop.f32.mrf.mxu1 }
 0x239   :  { %v2821_v5 = vadd.f32 %v5736_v11, %v2724_v8  ;;  %v5746_v36 = vpop.f32.mrf.mxu0  ;;  %v2731_v49 = vadd.f32 %v2730_v52, %v2635_v13 }
 0x23a   :  { %v2812_v40 = vpop.f32.mrf.mxu1 }
 0x23b   :  { %v2813_v42 = vadd.f32 %v2812_v40, %v2717_v30  ;;  %v2920_v3 = vadd.f32 %v5746_v36, %v2821_v5  ;;  %v2913_v57 = vpop.f32.mrf.mxu0 }
 0x23d   :  { %v2914_v61 = vadd.f32 %v2913_v57, %v2813_v42 }
 0x23e   :  { %v5739_v6 = vpop.f32.mrf.mxu1 }
 0x23f   :  { %v5749_v29 = vpop.f32.mrf.mxu0  ;;  %v2837_v50 = vadd.f32 %v5739_v6, %v2738_v39 }
 0x240   :  { %v2828_v24 = vpop.f32.mrf.mxu1 }
 0x241   :  { %v2925_v53 = vpop.f32.mrf.mxu0  ;;  %v2829_v27 = vadd.f32 %v2828_v24, %v2731_v49  ;;  %v2932_v38 = vadd.f32 %v5749_v29, %v2837_v50 }
 0x242   :  { %v5756_v43 = vpop.f32.mrf.mxu1 }
 0x243   :  { %v6771_v14 = vadd.f32 %v5756_v43, %v2920_v3  ;;  %v5766_v33 = vpop.f32.mrf.mxu0  ;;  %v2926_v46 = vadd.f32 %v2925_v53, %v2829_v27 }
 0x244   :  { %v3004_v22 = vpop.f32.mrf.mxu1 }
 0x245   :  { %v6773_v37 = vadd.f32 %v3004_v22, %v2914_v61  ;;  %v3184_v48 = vpop.f32.mrf.mxu0 }
 0x248   :  { %v5759_v15 = vpop.f32.mrf.mxu1 }
 0x249   :  { %v6775_v59 = vadd.f32 %v5759_v15, %v2932_v38  ;;  %v5769_v10 = vpop.f32.mrf.mxu0 }
 0x24a   :  { %v3016_v31 = vpop.f32.mrf.mxu1 }
 0x24b   :  { %v6777_v20 = vadd.f32 %v3016_v31, %v2926_v46  ;;  %3038 = vrot.lane.b32.xlu1 %v6775_v59, %s6089_s4  ;;  %v3204_v21 = vpop.f32.mrf.mxu0 }
 0x24c   :  { %v5776_v56 = vpop.f32.mrf.mxu1 }
 0x24d   :  { %v3302_v58 = vadd.f32 %v5776_v56, %v5766_v33  ;;  %3036 = vrot.lane.b32.xlu0 %v6777_v20, %s6089_s4  ;;  %v5786_v4 = vpop.f32.mrf.mxu0 }
 0x24e   :  { %v3295_v60 = vpop.f32.mrf.mxu1 }
 0x24f   :  { %v3296_v44 = vadd.f32 %v3295_v60, %v3184_v48  ;;  %v3397_v12 = vadd.f32 %v5786_v4, %v3302_v58  ;;  %v3389_v34 = vpop.f32.mrf.mxu0 }
 0x251   :  { %v3390_v63 = vadd.f32 %v3389_v34, %v3296_v44 }
 0x252   :  { %v5779_v17 = vpop.f32.mrf.mxu1 }
 0x253   :  { %v5789_v45 = vpop.f32.mrf.mxu0  ;;  %v3314_v30 = vadd.f32 %v5779_v17, %v5769_v10 }
 0x254   :  { %v3307_v9 = vpop.f32.mrf.mxu1 }
 0x255   :  { %v3403_v62 = vpop.f32.mrf.mxu0  ;;  %v3308_v47 = vadd.f32 %v3307_v9, %v3204_v21  ;;  %v3411_v5 = vadd.f32 %v5789_v45, %v3314_v30 }
 0x256   :  { %v5796_v41 = vpop.f32.mrf.mxu1 }
 0x257   :  { %v3494_v1 = vadd.f32 %v5796_v41, %v3397_v12  ;;  %v5806_v25 = vpop.f32.mrf.mxu0  ;;  %v3404_v42 = vadd.f32 %v3403_v62, %v3308_v47 }
 0x258   :  { %v3485_v26 = vpop.f32.mrf.mxu1 }
 0x259   :  { %v3486_v0 = vadd.f32 %v3485_v26, %v3390_v63  ;;  %v3593_v8 = vadd.f32 %v5806_v25, %v3494_v1  ;;  %v3586_v28 = vpop.f32.mrf.mxu0 }
 0x25b   :  { %v3587_v55 = vadd.f32 %v3586_v28, %v3486_v0 }
 0x25c   :  { %v5799_v16 = vpop.f32.mrf.mxu1 }
 0x25d   :  { %v5809_v52 = vpop.f32.mrf.mxu0  ;;  %v3510_v3 = vadd.f32 %v5799_v16, %v3411_v5 }
 0x25e   :  { %v3501_v11 = vpop.f32.mrf.mxu1 }
 0x25f   :  { %v3598_v36 = vpop.f32.mrf.mxu0  ;;  %v3502_v6 = vadd.f32 %v3501_v11, %v3404_v42  ;;  %v3605_v24 = vadd.f32 %v5809_v52, %v3510_v3 }
 0x260   :  { %v5816_v40 = vpop.f32.mrf.mxu1 }
 0x261   :  { %v6783_v57 = vadd.f32 %v5816_v40, %v3593_v8  ;;  %v5826_v18 = vpop.f32.mrf.mxu0  ;;  %v3599_v53 = vadd.f32 %v3598_v36, %v3502_v6 }
 0x262   :  { %v3677_v61 = vpop.f32.mrf.mxu1 }
 0x263   :  { %v6785_v13 = vadd.f32 %v3677_v61, %v3587_v55  ;;  %v3857_v29 = vpop.f32.mrf.mxu0 }
 0x266   :  { %v5819_v39 = vpop.f32.mrf.mxu1 }
 0x267   :  { %v6787_v43 = vadd.f32 %v5819_v39, %v3605_v24  ;;  %v5829_v49 = vpop.f32.mrf.mxu0 }
 0x268   :  { %v3689_v50 = vpop.f32.mrf.mxu1 }
 0x269   :  { %v6789_v33 = vadd.f32 %v3689_v50, %v3599_v53  ;;  %3711 = vrot.lane.b32.xlu1 %v6787_v43, %s6089_s4  ;;  %v3877_v22 = vpop.f32.mrf.mxu0 }
 0x26a   :  { %v5836_v27 = vpop.f32.mrf.mxu1 }
 0x26b   :  { %v3975_v48 = vadd.f32 %v5836_v27, %v5826_v18  ;;  %3709 = vrot.lane.b32.xlu0 %v6789_v33, %s6089_s4  ;;  %v5846_v38 = vpop.f32.mrf.mxu0 }
 0x26c   :  { %v3968_v15 = vpop.f32.mrf.mxu1 }
 0x26d   :  { %v3969_v46 = vadd.f32 %v3968_v15, %v3857_v29  ;;  %v4070_v10 = vadd.f32 %v5846_v38, %v3975_v48  ;;  %v4062_v31 = vpop.f32.mrf.mxu0 }
 0x26f   :  { %v4063_v21 = vadd.f32 %v4062_v31, %v3969_v46 }
 0x270   :  { %v5839_v56 = vpop.f32.mrf.mxu1 }
 0x271   :  { %v5849_v58 = vpop.f32.mrf.mxu0  ;;  %v3987_v62 = vadd.f32 %v5839_v56, %v5829_v49 }
 0x272   :  { %v3980_v4 = vpop.f32.mrf.mxu1 }
 0x273   :  { %v4076_v60 = vpop.f32.mrf.mxu0  ;;  %v3981_v25 = vadd.f32 %v3980_v4, %v3877_v22  ;;  %v4084_v8 = vadd.f32 %v5849_v58, %v3987_v62 }
 0x274   :  { %v5856_v44 = vpop.f32.mrf.mxu1 }
 0x275   :  { %v4167_v12 = vadd.f32 %v5856_v44, %v4070_v10  ;;  %v5866_v34 = vpop.f32.mrf.mxu0  ;;  %v4077_v55 = vadd.f32 %v4076_v60, %v3981_v25 }
 0x276   :  { %v4158_v63 = vpop.f32.mrf.mxu1 }
 0x277   :  { %v4159_v17 = vadd.f32 %v4158_v63, %v4063_v21  ;;  %v4266_v45 = vadd.f32 %v5866_v34, %v4167_v12  ;;  %v4259_v9 = vpop.f32.mrf.mxu0 }
 0x279   :  { %v4260_v41 = vadd.f32 %v4259_v9, %v4159_v17 }
 0x27a   :  { %v5859_v1 = vpop.f32.mrf.mxu1 }
 0x27b   :  { %v5869_v26 = vpop.f32.mrf.mxu0  ;;  %v4183_v16 = vadd.f32 %v5859_v1, %v4084_v8 }
 0x27c   :  { %v4174_v0 = vpop.f32.mrf.mxu1 }
 0x27d   :  { %v4271_v28 = vpop.f32.mrf.mxu0  ;;  %v4175_v5 = vadd.f32 %v4174_v0, %v4077_v55  ;;  %v4278_v42 = vadd.f32 %v5869_v26, %v4183_v16 }
 0x27e   :  { %v5876_v30 = vpop.f32.mrf.mxu1 }
 0x27f   :  { %v6795_v47 = vadd.f32 %v5876_v30, %v4266_v45  ;;  %v5886_v52 = vpop.f32.mrf.mxu0  ;;  %v4272_v18 = vadd.f32 %v4271_v28, %v4175_v5 }
 0x280   :  { %v4350_v11 = vpop.f32.mrf.mxu1 }
 0x281   :  { %v6797_v36 = vadd.f32 %v4350_v11, %v4260_v41  ;;  %v4530_v40 = vpop.f32.mrf.mxu0 }
 0x284   :  { %v5879_v3 = vpop.f32.mrf.mxu1 }
 0x285   :  { %v6799_v61 = vadd.f32 %v5879_v3, %v4278_v42  ;;  %v5889_v6 = vpop.f32.mrf.mxu0  ;;  %v1693_v42 = vpop.permute.xlu0 %1692 }
 0x286   :  { %v4362_v29 = vpop.f32.mrf.mxu1 }
 0x287   :  { %v6801_v24 = vadd.f32 %v4362_v29, %v4272_v18  ;;  %4384 = vrot.lane.b32.xlu1 %v6799_v61, %s6089_s4  ;;  %v4550_v39 = vpop.f32.mrf.mxu0  ;;  %v1697_v29 = vadd.f32 %v1693_v42, %v6747_v51 }
 0x288   :  { %v5896_v53 = vpop.f32.mrf.mxu1 }
 0x289   :  { %v4648_v49 = vadd.f32 %v5896_v53, %v5886_v52  ;;  %4382 = vrot.lane.b32.xlu0 %v6801_v24, %s6089_s4  ;;  %v5906_v50 = vpop.f32.mrf.mxu0  ;;  %v1701_v53 = vmul.f32 %v1697_v29, %v1697_v29 }
 0x28a   :  { %v4641_v22 = vpop.f32.mrf.mxu1 }
 0x28b   :  { %v4642_v27 = vadd.f32 %v4641_v22, %v4530_v40  ;;  %v4743_v48 = vadd.f32 %v5906_v50, %v4648_v49  ;;  %v4735_v38 = vpop.f32.mrf.mxu0 }
 0x28d   :  { %v5899_v15 = vpop.f32.mrf.mxu1  ;;  %v4736_v46 = vadd.f32 %v4735_v38, %v4642_v27 }
 0x28e   :  { %v4660_v58 = vadd.f32 %v5899_v15, %v5889_v6  ;;  %v1691_v6 = vpop.permute.xlu0 %1690 }
 0x28f   :  { %v4653_v10 = vpop.f32.mrf.mxu1  ;;  %v5909_v31 = vpop.f32.mrf.mxu0 }
 0x290   :  { %v4654_v12 = vadd.f32 %v4653_v10, %v4550_v39  ;;  %v4757_v9 = vadd.f32 %v5909_v31, %v4660_v58  ;;  %v1696_v39 = vadd.f32 %v1691_v6, %v6749_v7 }
 0x291   :  { %v5916_v21 = vpop.f32.mrf.mxu1  ;;  %v4749_v56 = vpop.f32.mrf.mxu0 }
 0x292   :  { %v4840_v4 = vadd.f32 %v5916_v21, %v4743_v48  ;;  %v4750_v25 = vadd.f32 %v4749_v56, %v4654_v12  ;;  %v1700_v49 = vmul.f32 %v1696_v39, %v1696_v39 }
 0x293   :  { %v4831_v60 = vpop.f32.mrf.mxu1  ;;  %v5926_v44 = vpop.f32.mrf.mxu0 }
 0x294   :  { %v4832_v34 = vadd.f32 %v4831_v60, %v4736_v46  ;;  %v4939_v63 = vadd.f32 %v5926_v44, %v4840_v4 }
 0x295   :  { %v5919_v17 = vpop.f32.mrf.mxu1  ;;  %v4932_v45 = vpop.f32.mrf.mxu0 }
 0x296   :  { %v4933_v62 = vadd.f32 %v4932_v45, %v4832_v34  ;;  %v4856_v26 = vadd.f32 %v5919_v17, %v4757_v9 }
 0x297   :  { %v4847_v41 = vpop.f32.mrf.mxu1  ;;  %v5929_v1 = vpop.f32.mrf.mxu0 }
 0x298   :  { %v4848_v8 = vadd.f32 %v4847_v41, %v4750_v25  ;;  %v4951_v16 = vadd.f32 %v5929_v1, %v4856_v26 }
 0x299   :  { %v5936_v0 = vpop.f32.mrf.mxu1  ;;  %v4944_v55 = vpop.f32.mrf.mxu0 }
 0x29a   :  { %v6807_v28 = vadd.f32 %v5936_v0, %v4939_v63  ;;  %v4945_v5 = vadd.f32 %v4944_v55, %v4848_v8 }
 0x29b   :  { %v5023_v30 = vpop.f32.mrf.mxu1 }
 0x29c   :  { %v6809_v52 = vadd.f32 %v5023_v30, %v4933_v62 }
 0x29d   :  { %v5939_v11 = vpop.f32.mrf.mxu1 }
 0x29e   :  { %v5042_v40 = vadd.f32 %v5939_v11, %v4951_v16 }
 0x29f   :  { %v5035_v3 = vpop.f32.mrf.mxu1 }
 0x2a0   :  { %v5036_v18 = vadd.f32 %v5035_v3, %v4945_v5  ;;  %5057 = vrot.lane.b32.xlu1 %v5042_v40, %s6089_s4 }
 0x2a2   :  { %5055 = vrot.lane.b32.xlu0 %v5036_v18, %s6089_s4 }
 0x2a4   :  { %1684 = vrot.lane.b32.xlu1 %v6751_v32, %s6090_s21  ;;  %v2366_v32 = vpop.permute.xlu1 %2365 }
 0x2a6   :  { %1682 = vrot.lane.b32.xlu0 %v6755_v35, %s6090_s21 }
 0x2a8   :  { %2357 = vrot.lane.b32.xlu1 %v6763_v2, %s6090_s21  ;;  %v2364_v35 = vpop.permute.xlu1 %2363  ;;  %v2370_v2 = vadd.f32 %v2366_v32, %v6759_v54 }
 0x2aa   :  { %2355 = vrot.lane.b32.xlu0 %v6767_v19, %s6090_s21  ;;  %v2369_v19 = vadd.f32 %v2364_v35, %v6761_v23  ;;  %v2374_v50 = vmul.f32 %v2370_v2, %v2370_v2 }
 0x2ac   :  { %1706 = vrot.lane.b32.xlu1 %v1701_v53, %s6090_s21 }
 0x2ae   :  { %1704 = vrot.lane.b32.xlu0 %v1700_v49, %s6090_s21 }
 0x2b0   :  { %3030 = vrot.lane.b32.xlu1 %v6775_v59, %s6090_s21  ;;  %v2373_v59 = vmul.f32 %v2369_v19, %v2369_v19 }
 0x2b2   :  { %3028 = vrot.lane.b32.xlu0 %v6777_v20, %s6090_s21 }
 0x2b4   :  { %3703 = vrot.lane.b32.xlu1 %v6787_v43, %s6090_s21 }
 0x2b6   :  { %3701 = vrot.lane.b32.xlu0 %v6789_v33, %s6090_s21 }
 0x2b8   :  { %4376 = vrot.lane.b32.xlu1 %v6799_v61, %s6090_s21 }
 0x2ba   :  { %4374 = vrot.lane.b32.xlu0 %v6801_v24, %s6090_s21 }
 0x2bc   :  { %2379 = vrot.lane.b32.xlu1 %v2374_v50, %s6090_s21 }
 0x2bd   :  { %v3039_v20 = vpop.permute.xlu1 %3038 }
 0x2be   :  { %2377 = vrot.lane.b32.xlu0 %v2373_v59, %s6090_s21  ;;  %v3043_v43 = vadd.f32 %v3039_v20, %v6771_v14 }
 0x2bf   :  { %v3037_v22 = vpop.permute.xlu0 %3036 }
 0x2c0   :  { %v3047_v27 = vmul.f32 %v3043_v43, %v3043_v43  ;;  %v3042_v33 = vadd.f32 %v3037_v22, %v6773_v37 }
 0x2c2   :  { %v3046_v48 = vmul.f32 %v3042_v33, %v3042_v33  ;;  %3052 = vrot.lane.b32.xlu1 %v3047_v27, %s6090_s21 }
 0x2c4   :  { %3050 = vrot.lane.b32.xlu0 %v3046_v48, %s6090_s21 }
 0x2db   :  { %v3712_v61 = vpop.permute.xlu1 %3711 }
 0x2dc   :  { %v3716_v24 = vadd.f32 %v3712_v61, %v6783_v57 }
 0x2dd   :  { %v3710_v38 = vpop.permute.xlu0 %3709 }
 0x2de   :  { %v3720_v15 = vmul.f32 %v3716_v24, %v3716_v24  ;;  %v3715_v46 = vadd.f32 %v3710_v38, %v6785_v13 }
 0x2e0   :  { %v3719_v10 = vmul.f32 %v3715_v46, %v3715_v46  ;;  %3725 = vrot.lane.b32.xlu1 %v3720_v15, %s6090_s21 }
 0x2e2   :  { %3723 = vrot.lane.b32.xlu0 %v3719_v10, %s6090_s21 }
 0x2f9   :  { %v4385_v31 = vpop.permute.xlu1 %4384 }
 0x2fa   :  { %v4389_v21 = vadd.f32 %v4385_v31, %v6795_v47 }
 0x2fb   :  { %v4383_v56 = vpop.permute.xlu0 %4382 }
 0x2fc   :  { %v4393_v58 = vmul.f32 %v4389_v21, %v4389_v21  ;;  %v4388_v4 = vadd.f32 %v4383_v56, %v6797_v36 }
 0x2fe   :  { %v4392_v60 = vmul.f32 %v4388_v4, %v4388_v4  ;;  %4398 = vrot.lane.b32.xlu1 %v4393_v58, %s6090_s21 }
 0x300   :  { %4396 = vrot.lane.b32.xlu0 %v4392_v60, %s6090_s21 }
 0x302   :  { %5049 = vrot.lane.b32.xlu1 %v5042_v40, %s6090_s21 }
 0x304   :  { %5047 = vrot.lane.b32.xlu0 %v5036_v18, %s6090_s21 }
 0x312   :  { %v5058_v44 = vpop.permute.xlu1 %5057 }
 0x313   :  { %v5062_v12 = vadd.f32 %v5058_v44, %v6807_v28 }
 0x314   :  { %v5056_v34 = vpop.permute.xlu0 %5055 }
 0x315   :  { %v5066_v63 = vmul.f32 %v5062_v12, %v5062_v12  ;;  %v5061_v17 = vadd.f32 %v5056_v34, %v6809_v52 }
 0x316   :  { %v1685_v45 = vpop.permute.xlu1 %1684 }
 0x317   :  { %v5065_v9 = vmul.f32 %v5061_v17, %v5061_v17  ;;  %5071 = vrot.lane.b32.xlu1 %v5066_v63, %s6090_s21  ;;  %v1689_v41 = vsub.f32 %v6747_v51, %v1685_v45 }
 0x318   :  { %v1683_v62 = vpop.permute.xlu0 %1682 }
 0x319   :  { %5069 = vrot.lane.b32.xlu0 %v5065_v9, %s6090_s21  ;;  %v1688_v25 = vsub.f32 %v6749_v7, %v1683_v62  ;;  %v1699_v0 = vmul.f32 %v1689_v41, %v1689_v41 }
 0x31a   :  { %v2358_v1 = vpop.permute.xlu1 %2357 }
 0x31b   :  { %v1698_v30 = vmul.f32 %v1688_v25, %v1688_v25  ;;  %v2362_v51 = vsub.f32 %v6759_v54, %v2358_v1 }
 0x31c   :  { %v2356_v26 = vpop.permute.xlu0 %2355 }
 0x31d   :  { %v2361_v18 = vsub.f32 %v6761_v23, %v2356_v26  ;;  %v2372_v39 = vmul.f32 %v2362_v51, %v2362_v51 }
 0x31e   :  { %v1707_v8 = vpop.permute.xlu1 %1706 }
 0x31f   :  { %v1711_v55 = vadd.f32 %v1707_v8, %v1699_v0  ;;  %v2371_v32 = vmul.f32 %v2361_v18, %v2361_v18 }
 0x320   :  { %v1705_v16 = vpop.permute.xlu0 %1704 }
 0x321   :  { %v1710_v11 = vadd.f32 %v1705_v16, %v1698_v30  ;;  %5971 = vrsqrt.f32 %v1711_v55  ;;  %vm1734_vm5 = vcmp.eq.f32.partialorder %v1711_v55, inf  ;;  %vm1736_vm7 = vcmp.eq.f32.partialorder %v1711_v55, 0.0 }
 0x322   :  { %v3031_v5 = vpop.permute.xlu1 %3030  ;;  %v1713_v46 = vsel %vm107_vm1, %v1711_v55, -inf }
 0x323   :  { %5973 = vrsqrt.f32 %v1710_v11  ;;  %v3035_v2 = vsub.f32 %v6771_v14, %v3031_v5  ;;  %v1712_v23 = vsel %vm107_vm1, %v1710_v11, -inf  ;;  %vm1727_vm6 = vcmp.eq.f32.partialorder %v1710_v11, inf }
 0x324   :  { %v3029_v40 = vpop.permute.xlu0 %3028  ;;  %vm1729_vm8 = vcmp.eq.f32.partialorder %v1710_v11, 0.0  ;;  %v1730_v27 = vand.u32 2147483648, %v1710_v11  ;;  %v1714_v21 = vmax.f32 %v1712_v23, %v1713_v46 }
 0x325   :  { %v3034_v20 = vsub.f32 %v6773_v37, %v3029_v40  ;;  %v3045_v14 = vmul.f32 %v3035_v2, %v3035_v2 }
 0x326   :  { %v6861_v42 = vpop.permute.xlu1 %3703 }
 0x327   :  { %v3044_v15 = vmul.f32 %v3034_v20, %v3034_v20  ;;  %v3708_v23 = vsub.f32 %v6783_v57, %v6861_v42 }
 0x328   :  { %v6863_v3 = vpop.permute.xlu0 %3701 }
 0x32a   :  { %v4377_v7 = vpop.permute.xlu1 %4376 }
 0x32b   :  { %v6868_v6 = vsub.f32 %v6795_v47, %v4377_v7  ;;  %v1737_v47 = vand.u32 2147483648, %v1711_v55 }
 0x32c   :  { %v4375_v29 = vpop.permute.xlu0 %4374 }
 0x32d   :  { %v6871_v53 = vsub.f32 %v6797_v36, %v4375_v29 }
 0x32e   :  { %v5972_v49 = vpop.eup %5971  ;;  %v2380_v35 = vpop.permute.xlu1 %2379 }
 0x32f   :  { %v2384_v19 = vadd.f32 %v2380_v35, %v2372_v39  ;;  %v1733_v50 = vmul.f32 %v5972_v49, %v1711_v55 }
 0x330   :  { %v5974_v54 = vpop.eup %5973  ;;  %v2378_v59 = vpop.permute.xlu0 %2377 }
 0x331   :  { %v2383_v43 = vadd.f32 %v2378_v59, %v2371_v32  ;;  %v1726_v36 = vmul.f32 %v5974_v54, %v1710_v11  ;;  %v1735_v22 = vsel %vm1734_vm5, %v1711_v55, %v1733_v50  ;;  %5975 = vrsqrt.f32 %v2384_v19 }
 0x332   :  { %v1738_v33 = vsel %vm1736_vm7, %v1737_v47, %v1735_v22  ;;  %v2386_v12 = vsel %vm107_vm1, %v2384_v19, -inf  ;;  %vm2407_vm9 = vcmp.eq.f32.partialorder %v2384_v19, inf  ;;  %v2410_v25 = vand.u32 2147483648, %v2384_v19 }
 0x333   :  { %v1728_v48 = vsel %vm1727_vm6, %v1710_v11, %v1726_v36  ;;  %v1740_v61 = vmul.f32 %v1738_v33, %v1711_v55  ;;  %5977 = vrsqrt.f32 %v2383_v43  ;;  %v2385_v37 = vsel %vm107_vm1, %v2383_v43, -inf }
 0x334   :  { %v1731_v24 = vsel %vm1729_vm8, %v1730_v27, %v1728_v48  ;;  %v3053_v38 = vpop.permute.xlu1 %3052  ;;  %v2387_v63 = vmax.f32 %v2385_v37, %v2386_v12  ;;  %vm2400_vm10 = vcmp.eq.f32.partialorder %v2383_v43, inf  ;;  %v2403_v26 = vand.u32 2147483648, %v2383_v43 }
 0x335   :  { %v1739_v10 = vmul.f32 %v1731_v24, %v1710_v11  ;;  %v3057_v31 = vadd.f32 %v3053_v38, %v3045_v14  ;;  %v1742_v4 = vsel %vm107_vm1, %v1740_v61, 0.0  ;;  %vm2409_vm11 = vcmp.eq.f32.partialorder %v2384_v19, 0.0 }
 0x336   :  { %v3051_v56 = vpop.permute.xlu0 %3050  ;;  %vm2402_vm12 = vcmp.eq.f32.partialorder %v2383_v43, 0.0  ;;  %v3707_v36 = vsub.f32 %v6785_v13, %v6863_v3  ;;  %v3718_v22 = vmul.f32 %v3708_v23, %v3708_v23 }
 0x337   :  { %v1741_v58 = vsel %vm107_vm1, %v1739_v10, 0.0  ;;  %v3056_v60 = vadd.f32 %v3051_v56, %v3044_v15  ;;  %5979 = vrsqrt.f32 %v3057_v31  ;;  %v3059_v17 = vsel %vm107_vm1, %v3057_v31, -inf }
 0x338   :  { %1715 = vmax.xlane.f32.xlu0 %v1714_v21  ;;  %v1743_v44 = vadd.f32 %v1742_v4, %v1741_v58  ;;  %vm3080_vm13 = vcmp.eq.f32.partialorder %v3057_v31, inf  ;;  %vm3082_vm14 = vcmp.eq.f32.partialorder %v3057_v31, 0.0  ;;  %v3083_v18 = vand.u32 2147483648, %v3057_v31 }
 0x339   :  { %v3058_v34 = vsel %vm107_vm1, %v3056_v60, -inf  ;;  %5981 = vrsqrt.f32 %v3056_v60  ;;  %vm3073_vm15 = vcmp.eq.f32.partialorder %v3056_v60, inf  ;;  %v3076_v35 = vand.u32 2147483648, %v3056_v60 }
 0x33a   :  { %v3060_v45 = vmax.f32 %v3058_v34, %v3059_v17  ;;  %vm3075_vm0 = vcmp.eq.f32.partialorder %v3056_v60, 0.0  ;;  %v3717_v33 = vmul.f32 %v3707_v36, %v3707_v36  ;;  %v4391_v34 = vmul.f32 %v6868_v6, %v6868_v6 }
 0x33b   :  { %1744 = vadd.xlane.f32.xlu1 %v1743_v44  ;;  %v4390_v17 = vmul.f32 %v6871_v53, %v6871_v53 }
 0x33c   :  { %2388 = vmax.xlane.f32.xlu0 %v2387_v63 }
 0x33e   :  { %v5976_v9 = vpop.eup %5975 }
 0x33f   :  { %3061 = vmax.xlane.f32.xlu1 %v3060_v45  ;;  %v2406_v41 = vmul.f32 %v5976_v9, %v2384_v19 }
 0x340   :  { %v5978_v62 = vpop.eup %5977 }
 0x341   :  { %v2399_v1 = vmul.f32 %v5978_v62, %v2383_v43  ;;  %v2408_v0 = vsel %vm2407_vm9, %v2384_v19, %v2406_v41 }
 0x342   :  { %v2411_v30 = vsel %vm2409_vm11, %v2410_v25, %v2408_v0 }
 0x343   :  { %v2401_v8 = vsel %vm2400_vm10, %v2383_v43, %v2399_v1  ;;  %v2413_v11 = vmul.f32 %v2411_v30, %v2384_v19 }
 0x344   :  { %v5980_v55 = vpop.eup %5979  ;;  %v2404_v16 = vsel %vm2402_vm12, %v2403_v26, %v2401_v8 }
 0x345   :  { %v2412_v5 = vmul.f32 %v2404_v16, %v2383_v43  ;;  %v3079_v40 = vmul.f32 %v5980_v55, %v3057_v31  ;;  %v2415_v29 = vsel %vm107_vm1, %v2413_v11, 0.0 }
 0x346   :  { %v5982_v51 = vpop.eup %5981 }
 0x347   :  { %v2414_v7 = vsel %vm107_vm1, %v2412_v5, 0.0  ;;  %v3072_v39 = vmul.f32 %v5982_v51, %v3056_v60  ;;  %v3081_v49 = vsel %vm3080_vm13, %v3057_v31, %v3079_v40 }
 0x348   :  { %v2416_v32 = vadd.f32 %v2415_v29, %v2414_v7  ;;  %v3084_v2 = vsel %vm3082_vm14, %v3083_v18, %v3081_v49 }
 0x349   :  { %v3074_v50 = vsel %vm3073_vm15, %v3056_v60, %v3072_v39  ;;  %v3086_v54 = vmul.f32 %v3084_v2, %v3057_v31 }
 0x34a   :  { %2417 = vadd.xlane.f32.xlu0 %v2416_v32  ;;  %v3077_v19 = vsel %vm3075_vm0, %v3076_v35, %v3074_v50 }
 0x34b   :  { %v3085_v59 = vmul.f32 %v3077_v19, %v3056_v60  ;;  %v3088_v20 = vsel %vm107_vm1, %v3086_v54, 0.0 }
 0x34d   :  { %v3087_v47 = vsel %vm107_vm1, %v3085_v59, 0.0 }
 0x34e   :  { %v3089_v43 = vadd.f32 %v3088_v20, %v3087_v47 }
 0x350   :  { %3090 = vadd.xlane.f32.xlu0 %v3089_v43 }
 0x352   :  { %v3726_v27 = vpop.permute.xlu1 %3725 }
 0x353   :  { %v3730_v14 = vadd.f32 %v3726_v27, %v3718_v22 }
 0x354   :  { %v3724_v48 = vpop.permute.xlu0 %3723 }
 0x355   :  { %v3729_v61 = vadd.f32 %v3724_v48, %v3717_v33  ;;  %5983 = vrsqrt.f32 %v3730_v14  ;;  %v3732_v57 = vsel %vm107_vm1, %v3730_v14, -inf  ;;  %vm3753_vm2 = vcmp.eq.f32.partialorder %v3730_v14, inf }
 0x356   :  { %v3756_v13 = vand.u32 2147483648, %v3730_v14  ;;  %vm3755_vm3 = vcmp.eq.f32.partialorder %v3730_v14, 0.0 }
 0x357   :  { %v3731_v24 = vsel %vm107_vm1, %v3729_v61, -inf  ;;  %5985 = vrsqrt.f32 %v3729_v61  ;;  %vm3746_vm4 = vcmp.eq.f32.partialorder %v3729_v61, inf  ;;  %v3749_v31 = vand.u32 2147483648, %v3729_v61 }
 0x358   :  { %v3733_v42 = vmax.f32 %v3731_v24, %v3732_v57  ;;  %vm3748_vm5 = vcmp.eq.f32.partialorder %v3729_v61, 0.0 }
 0x35a   :  { %3734 = vmax.xlane.f32.xlu1 %v3733_v42 }
 0x362   :  { %v5984_v38 = vpop.eup %5983 }
 0x363   :  { %v3752_v15 = vmul.f32 %v5984_v38, %v3730_v14 }
 0x364   :  { %v5986_v46 = vpop.eup %5985 }
 0x365   :  { %v3745_v3 = vmul.f32 %v5986_v46, %v3729_v61  ;;  %v3754_v10 = vsel %vm3753_vm2, %v3730_v14, %v3752_v15 }
 0x366   :  { %v3757_v21 = vsel %vm3755_vm3, %v3756_v13, %v3754_v10 }
 0x367   :  { %v3747_v37 = vsel %vm3746_vm4, %v3729_v61, %v3745_v3  ;;  %v3759_v56 = vmul.f32 %v3757_v21, %v3730_v14 }
 0x368   :  { %v3750_v58 = vsel %vm3748_vm5, %v3749_v31, %v3747_v37 }
 0x369   :  { %v3758_v4 = vmul.f32 %v3750_v58, %v3729_v61  ;;  %v3761_v44 = vsel %vm107_vm1, %v3759_v56, 0.0 }
 0x36b   :  { %v3760_v60 = vsel %vm107_vm1, %v3758_v4, 0.0 }
 0x36c   :  { %v3762_v12 = vadd.f32 %v3761_v44, %v3760_v60 }
 0x36e   :  { %3763 = vadd.xlane.f32.xlu0 %v3762_v12 }
 0x370   :  { %v4399_v63 = vpop.permute.xlu1 %4398 }
 0x371   :  { %v4403_v45 = vadd.f32 %v4399_v63, %v4391_v34 }
 0x372   :  { %v4397_v9 = vpop.permute.xlu0 %4396 }
 0x373   :  { %v4402_v62 = vadd.f32 %v4397_v9, %v4390_v17  ;;  %5987 = vrsqrt.f32 %v4403_v45  ;;  %v4405_v1 = vsel %vm107_vm1, %v4403_v45, -inf  ;;  %vm4426_vm6 = vcmp.eq.f32.partialorder %v4403_v45, inf }
 0x374   :  { %v5050_v0 = vpop.permute.xlu1 %5049  ;;  %v4429_v6 = vand.u32 2147483648, %v4403_v45  ;;  %vm4428_vm7 = vcmp.eq.f32.partialorder %v4403_v45, 0.0 }
 0x375   :  { %v4404_v41 = vsel %vm107_vm1, %v4402_v62, -inf  ;;  %5989 = vrsqrt.f32 %v4402_v62  ;;  %v5054_v11 = vsub.f32 %v6807_v28, %v5050_v0  ;;  %vm4419_vm8 = vcmp.eq.f32.partialorder %v4402_v62, inf }
 0x376   :  { %v4406_v25 = vmax.f32 %v4404_v41, %v4405_v1  ;;  %v5048_v55 = vpop.permute.xlu0 %5047  ;;  %v4422_v5 = vand.u32 2147483648, %v4402_v62  ;;  %vm4421_vm9 = vcmp.eq.f32.partialorder %v4402_v62, 0.0 }
 0x377   :  { %v5053_v7 = vsub.f32 %v6809_v52, %v5048_v55  ;;  %v5064_v49 = vmul.f32 %v5054_v11, %v5054_v11 }
 0x378   :  { %4407 = vmax.xlane.f32.xlu1 %v4406_v25 }
 0x379   :  { %v5063_v50 = vmul.f32 %v5053_v7, %v5053_v7 }
 0x380   :  { %v5988_v26 = vpop.eup %5987 }
 0x381   :  { %v4425_v8 = vmul.f32 %v5988_v26, %v4403_v45 }
 0x382   :  { %v5990_v30 = vpop.eup %5989 }
 0x383   :  { %v4418_v16 = vmul.f32 %v5990_v30, %v4402_v62  ;;  %v4427_v53 = vsel %vm4426_vm6, %v4403_v45, %v4425_v8 }
 0x384   :  { %v4430_v40 = vsel %vm4428_vm7, %v4429_v6, %v4427_v53 }
 0x385   :  { %v4420_v51 = vsel %vm4419_vm8, %v4402_v62, %v4418_v16  ;;  %v4432_v18 = vmul.f32 %v4430_v40, %v4403_v45 }
 0x386   :  { %v4423_v29 = vsel %vm4421_vm9, %v4422_v5, %v4420_v51 }
 0x387   :  { %v4431_v39 = vmul.f32 %v4423_v29, %v4402_v62  ;;  %v4434_v2 = vsel %vm107_vm1, %v4432_v18, 0.0 }
 0x389   :  { %v5072_v32 = vpop.permute.xlu1 %5071  ;;  %v4433_v35 = vsel %vm107_vm1, %v4431_v39, 0.0 }
 0x38a   :  { %v5076_v54 = vadd.f32 %v5072_v32, %v5064_v49  ;;  %v4435_v19 = vadd.f32 %v4434_v2, %v4433_v35 }
 0x38b   :  { %v5070_v28 = vpop.permute.xlu0 %5069 }
 0x38c   :  { %v5075_v59 = vadd.f32 %v5070_v28, %v5063_v50  ;;  %4436 = vadd.xlane.f32.xlu0 %v4435_v19  ;;  %5991 = vrsqrt.f32 %v5076_v54  ;;  %v5078_v47 = vsel %vm107_vm1, %v5076_v54, -inf  ;;  %vm5099_vm10 = vcmp.eq.f32.partialorder %v5076_v54, inf }
 0x38d   :  { %v5102_v22 = vand.u32 2147483648, %v5076_v54  ;;  %vm5101_vm11 = vcmp.eq.f32.partialorder %v5076_v54, 0.0 }
 0x38e   :  { %v5077_v23 = vsel %vm107_vm1, %v5075_v59, -inf  ;;  %5993 = vrsqrt.f32 %v5075_v59  ;;  %vm5092_vm12 = vcmp.eq.f32.partialorder %v5075_v59, inf  ;;  %v5095_v14 = vand.u32 2147483648, %v5075_v59 }
 0x38f   :  { %v5079_v52 = vmax.f32 %v5077_v23, %v5078_v47  ;;  %vm5094_vm13 = vcmp.eq.f32.partialorder %v5075_v59, 0.0 }
 0x391   :  { %5080 = vmax.xlane.f32.xlu1 %v5079_v52 }
 0x399   :  { %v5992_v20 = vpop.eup %5991 }
 0x39a   :  { %v5098_v43 = vmul.f32 %v5992_v20, %v5076_v54 }
 0x39b   :  { %v5994_v36 = vpop.eup %5993 }
 0x39c   :  { %v5091_v27 = vmul.f32 %v5994_v36, %v5075_v59  ;;  %v5100_v33 = vsel %vm5099_vm10, %v5076_v54, %v5098_v43  ;;  %vm5130_vm10 = vcmask 0  }
 0x39d   :  { %v5103_v48 = vsel %vm5101_vm11, %v5102_v22, %v5100_v33 }
 0x39e   :  { %v5093_v61 = vsel %vm5092_vm12, %v5075_v59, %v5091_v27  ;;  %v5105_v24 = vmul.f32 %v5103_v48, %v5076_v54 }
 0x39f   :  { %v5096_v57 = vsel %vm5094_vm13, %v5095_v14, %v5093_v61 }
 0x3a0   :  { %v5104_v42 = vmul.f32 %v5096_v57, %v5075_v59  ;;  %v5107_v15 = vsel %vm107_vm1, %v5105_v24, 0.0 }
 0x3a2   :  { %v5106_v38 = vsel %vm107_vm1, %v5104_v42, 0.0 }
 0x3a3   :  { %v5108_v46 = vadd.f32 %v5107_v15, %v5106_v38 }
 0x3a5   :  { %5109 = vadd.xlane.f32.xlu0 %v5108_v46 }
 0x3c1   :  { %v1716_v13 = vpop.xlane.xlu0 %1715 }
 0x3c2   :  { %v1717_v3 = vrot.slane %v1716_v13, 4 }
 0x3c4   :  { %v1718_v10 = vmax.f32 %v1716_v13, %v1717_v3  ;;  %v1745_v31 = vpop.xlane.xlu1 %1744 }
 0x3c5   :  { %v1746_v21 = vrot.slane %v1745_v31, 4  ;;  %v2389_v37 = vpop.xlane.xlu0 %2388 }
 0x3c6   :  { %v1719_v56 = vrot.slane %v1718_v10, 2  ;;  %v2390_v58 = vrot.slane %v2389_v37, 4 }
 0x3c7   :  { %v1747_v4 = vadd.f32 %v1746_v21, %v1745_v31 }
 0x3c8   :  { %v2391_v60 = vmax.f32 %v2389_v37, %v2390_v58  ;;  %v1720_v44 = vmax.f32 %v1718_v10, %v1719_v56  ;;  %v3062_v12 = vpop.xlane.xlu1 %3061 }
 0x3c9   :  { %v1748_v34 = vrot.slane %v1747_v4, 2  ;;  %v3063_v63 = vrot.slane %v3062_v12, 4 }
 0x3ca   :  { %v2392_v17 = vrot.slane %v2391_v60, 2  ;;  %v1721_v45 = vrot.slane %v1720_v44, 1 }
 0x3cb   :  { %v1749_v9 = vadd.f32 %v1748_v34, %v1747_v4  ;;  %v3064_v25 = vmax.f32 %v3062_v12, %v3063_v63 }
 0x3cc   :  { %v1722_v62 = vmax.f32 %v1720_v44, %v1721_v45  ;;  %v2393_v41 = vmax.f32 %v2391_v60, %v2392_v17 }
 0x3cd   :  { %v1750_v1 = vrot.slane %v1749_v9, 1  ;;  %v3065_v30 = vrot.slane %v3064_v25, 2 }
 0x3ce   :  { %5940 = vpush %v1722_v62  ;;  %v2394_v26 = vrot.slane %v2393_v41, 1 }
 0x3cf   :  { %v1751_v0 = vadd.f32 %v1750_v1, %v1749_v9  ;;  %v3066_v16 = vmax.f32 %v3064_v25, %v3065_v30 }
 0x3d0   :  { %v2395_v8 = vmax.f32 %v2393_v41, %v2394_v26 }
 0x3d1   :  { %5942 = vpush %v1751_v0  ;;  %v3067_v5 = vrot.slane %v3066_v16, 1 }
 0x3d2   :  { %5944 = vpush %v2395_v8 }
 0x3d3   :  { %v2418_v6 = vpop.xlane.xlu0 %2417  ;;  %v3068_v39 = vmax.f32 %v3066_v16, %v3067_v5 }
 0x3d4   :  { %v2419_v55 = vrot.slane %v2418_v6, 4 }
 0x3d6   :  { %v2420_v53 = vadd.f32 %v2419_v55, %v2418_v6 }
 0x3d8   :  { %v2421_v11 = vrot.slane %v2420_v53, 2 }
 0x3d9   :  { %v3091_v40 = vpop.xlane.xlu0 %3090 }
 0x3da   :  { %v2422_v51 = vadd.f32 %v2421_v11, %v2420_v53  ;;  %v3092_v18 = vrot.slane %v3091_v40, 4 }
 0x3dc   :  { %v2423_v7 = vrot.slane %v2422_v51, 1  ;;  %v3093_v29 = vadd.f32 %v3092_v18, %v3091_v40 }
 0x3de   :  { %v2424_v49 = vadd.f32 %v2423_v7, %v2422_v51  ;;  %v3094_v32 = vrot.slane %v3093_v29, 2 }
 0x3e0   :  { %5946 = vpush %v2424_v49  ;;  %v3095_v35 = vadd.f32 %v3094_v32, %v3093_v29 }
 0x3e1   :  { %5948 = vpush %v3068_v39 }
 0x3e2   :  { %v3096_v2 = vrot.slane %v3095_v35, 1 }
 0x3e3   :  { %v3735_v50 = vpop.xlane.xlu1 %3734 }
 0x3e4   :  { %v3736_v54 = vrot.slane %v3735_v50, 4  ;;  %v3097_v19 = vadd.f32 %v3096_v2, %v3095_v35 }
 0x3e6   :  { %v3737_v28 = vmax.f32 %v3735_v50, %v3736_v54  ;;  %5950 = vpush %v3097_v19 }
 0x3e8   :  { %v3738_v59 = vrot.slane %v3737_v28, 2 }
 0x3ea   :  { %v3739_v23 = vmax.f32 %v3737_v28, %v3738_v59 }
 0x3ec   :  { %v3740_v47 = vrot.slane %v3739_v23, 1 }
 0x3ee   :  { %v3741_v52 = vmax.f32 %v3739_v23, %v3740_v47 }
 0x3f0   :  { %5952 = vpush %v3741_v52 }
 0x3f7   :  { %v3764_v20 = vpop.xlane.xlu0 %3763 }
 0x3f8   :  { %v3765_v43 = vrot.slane %v3764_v20, 4 }
 0x3fa   :  { %v3766_v36 = vadd.f32 %v3765_v43, %v3764_v20 }
 0x3fc   :  { %v3767_v22 = vrot.slane %v3766_v36, 2 }
 0x3fe   :  { %v3768_v27 = vadd.f32 %v3767_v22, %v3766_v36 }
 0x3ff   :  { %s5941_s22 = spop %5940 }
 0x400   :  { %v3769_v33 = vrot.slane %v3768_v27, 1  ;;  %v1724_v26 = vstv %s5941_s22 }
 0x401   :  { %v4408_v14 = vpop.xlane.xlu1 %4407  ;;  %vm1756_vm14 = vcmp.eq.f32.partialorder %v1724_v26, inf  ;;  %v1759_v18 = vand.u32 2147483648, %v1724_v26  ;;  %vm1758_vm2 = vcmp.eq.f32.partialorder %v1724_v26, 0.0 }
 0x402   :  { %v4409_v48 = vrot.slane %v4408_v14, 4  ;;  %v3770_v61 = vadd.f32 %v3769_v33, %v3768_v27  ;;  %s6909_s23 = spop %5942 }
 0x403   :  { %s5945_s24 = spop %5944 }
 0x404   :  { %v4410_v24 = vmax.f32 %v4408_v14, %v4409_v48  ;;  %5954 = vpush %v3770_v61  ;;  %v2397_v25 = vstv %s5945_s24 }
 0x405   :  { %5995 = vrsqrt.f32 %v2397_v25  ;;  %vm2429_vm1 = vcmp.eq.f32.partialorder %v2397_v25, inf  ;;  %v2432_v49 = vand.u32 2147483648, %v2397_v25  ;;  %vm2431_vm0 = vcmp.eq.f32.partialorder %v2397_v25, 0.0 }
 0x406   :  { %v4411_v57 = vrot.slane %v4410_v24, 2  ;;  %5997 = vrsqrt.f32 %v1724_v26 }
 0x408   :  { %v4412_v42 = vmax.f32 %v4410_v24, %v4411_v57 }
 0x40a   :  { %v4413_v38 = vrot.slane %v4412_v42, 1 }
 0x40c   :  { %v4414_v15 = vmax.f32 %v4412_v42, %v4413_v38 }
 0x40e   :  { %5956 = vpush %v4414_v15 }
 0x411   :  { %s6911_s25 = spop %5946 }
 0x412   :  { %s5949_s26 = spop %5948  ;;  %v5996_v6 = vpop.eup %5995 }
 0x413   :  { %v3070_v0 = vstv %s5949_s26  ;;  %v5998_v55 = vpop.eup %5997  ;;  %v2428_v53 = vmul.f32 %v5996_v6, %v2397_v25 }
 0x414   :  { %5999 = vrsqrt.f32 %v3070_v0  ;;  %v1755_v5 = vmul.f32 %v5998_v55, %v1724_v26  ;;  %vm3102_vm15 = vcmp.eq.f32.partialorder %v3070_v0, inf  ;;  %v3105_v54 = vand.u32 2147483648, %v3070_v0 }
 0x415   :  { %v4437_v46 = vpop.xlane.xlu0 %4436  ;;  %v2430_v7 = vsel %vm2429_vm1, %v2397_v25, %v2428_v53  ;;  %vm3104_vm4 = vcmp.eq.f32.partialorder %v3070_v0, 0.0 }
 0x416   :  { %v4438_v13 = vrot.slane %v4437_v46, 4  ;;  %v1757_v39 = vsel %vm1756_vm14, %v1724_v26, %v1755_v5  ;;  %v2433_v50 = vsel %vm2431_vm0, %v2432_v49, %v2430_v7 }
 0x417   :  { %s6913_s27 = spop %5950  ;;  %v1760_v19 = vsel %vm1758_vm2, %v1759_v18, %v1757_v39  ;;  %v2434_v47 = vmax.f32 %v2433_v50, 1e-30 }
 0x418   :  { %v4439_v3 = vadd.f32 %v4438_v13, %v4437_v46  ;;  %v1761_v20 = vmax.f32 %v1760_v19, 1e-30 }
 0x41a   :  { %v4440_v10 = vrot.slane %v4439_v3, 2  ;;  %v5081_v31 = vpop.xlane.xlu1 %5080 }
 0x41b   :  { %v5082_v21 = vrot.slane %v5081_v31, 4 }
 0x41c   :  { %v4441_v37 = vadd.f32 %v4440_v10, %v4439_v3  ;;  %v2426_v3 = vstv %s6911_s25 }
 0x41d   :  { %v5083_v56 = vmax.f32 %v5081_v31, %v5082_v21  ;;  %v1753_v21 = vstv %s6909_s23 }
 0x41e   :  { %v4442_v58 = vrot.slane %v4441_v37, 1 }
 0x41f   :  { %v5084_v4 = vrot.slane %v5083_v56, 2 }
 0x420   :  { %v4443_v60 = vadd.f32 %v4442_v58, %v4441_v37  ;;  %v3099_v37 = vstv %s6913_s27 }
 0x421   :  { %v5085_v44 = vmax.f32 %v5083_v56, %v5084_v4  ;;  %s5953_s28 = spop %5952  ;;  %v6000_v16 = vpop.eup %5999 }
 0x422   :  { %5958 = vpush %v4443_v60  ;;  %v3743_v8 = vstv %s5953_s28  ;;  %v3101_v40 = vmul.f32 %v6000_v16, %v3070_v0 }
 0x423   :  { %v5086_v12 = vrot.slane %v5085_v44, 1  ;;  %6001 = vrsqrt.f32 %v3743_v8  ;;  %vm3775_vm3 = vcmp.eq.f32.partialorder %v3743_v8, inf  ;;  %v3778_v23 = vand.u32 2147483648, %v3743_v8 }
 0x424   :  { %v3103_v35 = vsel %vm3102_vm15, %v3070_v0, %v3101_v40  ;;  %vm3777_vm6 = vcmp.eq.f32.partialorder %v3743_v8, 0.0 }
 0x425   :  { %v5087_v34 = vmax.f32 %v5085_v44, %v5086_v12  ;;  %v3106_v59 = vsel %vm3104_vm4, %v3105_v54, %v3103_v35 }
 0x426   :  { %v3107_v22 = vmax.f32 %v3106_v59, 1e-30 }
 0x427   :  { %5960 = vpush %v5087_v34 }
 0x42e   :  { %v5110_v63 = vpop.xlane.xlu0 %5109 }
 0x42f   :  { %v5111_v17 = vrot.slane %v5110_v63, 4 }
 0x430   :  { %v6002_v11 = vpop.eup %6001 }
 0x431   :  { %v5112_v45 = vadd.f32 %v5111_v17, %v5110_v63  ;;  %v3774_v29 = vmul.f32 %v6002_v11, %v3743_v8 }
 0x433   :  { %v5113_v9 = vrot.slane %v5112_v45, 2  ;;  %v3776_v28 = vsel %vm3775_vm3, %v3743_v8, %v3774_v29 }
 0x434   :  { %v3779_v43 = vsel %vm3777_vm6, %v3778_v23, %v3776_v28 }
 0x435   :  { %v5114_v62 = vadd.f32 %v5113_v9, %v5112_v45  ;;  %s6915_s29 = spop %5954  ;;  %v3780_v33 = vmax.f32 %v3779_v43, 1e-30 }
 0x436   :  { %v3772_v60 = vstv %s6915_s29 }
 0x437   :  { %v5115_v41 = vrot.slane %v5114_v62, 1 }
 0x439   :  { %v5116_v1 = vadd.f32 %v5115_v41, %v5114_v62 }
 0x43b   :  { %5962 = vpush %v5116_v1 }
 0x43f   :  { %s5957_s30 = spop %5956 }
 0x440   :  { %v4416_v30 = vstv %s5957_s30 }
 0x441   :  { %6003 = vrsqrt.f32 %v4416_v30  ;;  %vm4448_vm5 = vcmp.eq.f32.partialorder %v4416_v30, inf  ;;  %v4451_v36 = vand.u32 2147483648, %v4416_v30  ;;  %vm4450_vm7 = vcmp.eq.f32.partialorder %v4416_v30, 0.0 }
 0x44e   :  { %v6004_v51 = vpop.eup %6003 }
 0x44f   :  { %v4447_v2 = vmul.f32 %v6004_v51, %v4416_v30 }
 0x451   :  { %v4449_v52 = vsel %vm4448_vm5, %v4416_v30, %v4447_v2 }
 0x452   :  { %v4452_v27 = vsel %vm4450_vm7, %v4451_v36, %v4449_v52 }
 0x453   :  { %s6917_s0 = spop %5958  ;;  %v4453_v14 = vmax.f32 %v4452_v27, 1e-30 }
 0x454   :  { %v4445_v34 = vstv %s6917_s0 }
 0x458   :  { %s5961_s6 = spop %5960 }
 0x459   :  { %v5089_v32 = vstv %s5961_s6 }
 0x45a   :  { %6005 = vrsqrt.f32 %v5089_v32  ;;  %vm5121_vm8 = vcmp.eq.f32.partialorder %v5089_v32, inf  ;;  %v5124_v24 = vand.u32 2147483648, %v5089_v32  ;;  %vm5123_vm9 = vcmp.eq.f32.partialorder %v5089_v32, 0.0 }
 0x45b   :  { %6007 = vrcp.f32 %v2434_v47 }
 0x45c   :  { %6009 = vrcp.f32 %v1761_v20 }
 0x45d   :  { %6011 = vrcp.f32 %v3107_v22 }
 0x45e   :  { %6013 = vrcp.f32 %v3780_v33 }
 0x45f   :  { %6015 = vrcp.f32 %v4453_v14 }
 0x467   :  { %v6006_v48 = vpop.eup %6005 }
 0x468   :  { %v5120_v61 = vmul.f32 %v6006_v48, %v5089_v32  ;;  %v6008_v15 = vpop.eup %6007 }
 0x469   :  { %v6010_v46 = vpop.eup %6009  ;;  %v2436_v10 = vmul.f32 %v6008_v15, %v2426_v3 }
 0x46a   :  { %v5122_v57 = vsel %vm5121_vm8, %v5089_v32, %v5120_v61  ;;  %v6012_v13 = vpop.eup %6011  ;;  %v1763_v56 = vmul.f32 %v6010_v46, %v1753_v21 }
 0x46b   :  { %v5125_v42 = vsel %vm5123_vm9, %v5124_v24, %v5122_v57  ;;  %v6014_v31 = vpop.eup %6013  ;;  %v3109_v58 = vmul.f32 %v6012_v13, %v3099_v37 }
 0x46c   :  { %v5126_v38 = vmax.f32 %v5125_v42, 1e-30  ;;  %v6016_v4 = vpop.eup %6015  ;;  %v2437_v44 = vadd.f32 %v2436_v10, %v1763_v56  ;;  %v3782_v12 = vmul.f32 %v6014_v31, %v3772_v60  ;;  %s5963_s7 = spop %5962 }
 0x46d   :  { %v4455_v17 = vmul.f32 %v6016_v4, %v4445_v34  ;;  %v5118_v62 = vstv %s5963_s7 }
 0x46e   :  { %6017 = vrcp.f32 %v5126_v38  ;;  %v3110_v63 = vadd.f32 %v3109_v58, %v2437_v44 }
 0x470   :  { %v3783_v45 = vadd.f32 %v3782_v12, %v3110_v63 }
 0x472   :  { %v4456_v41 = vadd.f32 %v4455_v17, %v3783_v45 }
 0x47b   :  { %v6018_v9 = vpop.eup %6017 }
 0x47c   :  { %v5128_v1 = vmul.f32 %v6018_v9, %v5118_v62 }
 0x47e   :  { %v5129_v25 = vadd.f32 %v5128_v1, %v4456_v41 }
 0x480   :  { %5131 = vst.msk [vmem:[#allocation7] sm:$0x1] %vm5130_vm10, %v5129_v25 }
 0x481   :  { %6070 = shalt.err (!%p6067_p0)
}
 0x482   :  { %5141 = dma.vmem_to_hbm [thread:$0]  %s5139_s9, 16, %s6932_s5, [#allocation4]  }
 0x483   :  { %6083 = dma.done.wait [#allocation4], 16  }
 0x484   :  { %6084 = vsyncadd [#allocation4], 4294967280 }
 0x485   :  { %5145 = vsyncpa [#allocation3], 1 }
 0x486   :  { %5146 = vsyncpa [#allocation6], 1 }
 0x487   :  { %5147 = vsyncpa [#allocation4], 1 }

</bundles_post_ra>
